<compile_context>
chip_gen: v6e
topology: v6e:2x2x1
jax: 0.10.0
libtpu: 0.0.40
codegen_flags: <defaults>
</compile_context>

<pallas_src>
import functools

import jax
import jax.numpy as jnp
from jax.experimental import pallas as pl
from jax.experimental.pallas import tpu as pltpu

_LANE = 128      # last-dim alignment (vreg lane width)
_SUBLANE = 16    # second-to-last alignment (covers f32 (8) and bf16 (16) tiles)


def _round_up(v, m):
    return ((v + m - 1) // m) * m


def _vmem_capacity_bytes():
    """Generation-aware physical VMEM size; conservative fallback if unavailable."""
    try:
        return int(pltpu.get_tpu_info().vmem_capacity_bytes)
    except Exception:
        return 64 << 20  # v7x per-TensorCore VMEM (most restrictive generation)


def _mlp_kernel(x_ref, w1_ref, b1_ref, w2_ref, b2_ref, o_ref, *, compute_dtype, precision):
    # fc1: (TM, In_p) @ (In_p, H_p) on the MXU, f32 accumulation.
    h = jnp.dot(x_ref[...], w1_ref[...],
                preferred_element_type=jnp.float32, precision=precision)
    # Bias + ReLU in f32 on the VPU.
    h = jnp.maximum(h + b1_ref[...], 0.0)
    # Cast activation to the MXU operand dtype for fc2.
    h = h.astype(compute_dtype)
    # fc2: (TM, H_p) @ (H_p, Out_p), f32 accumulation.
    out = jnp.dot(h, w2_ref[...],
                  preferred_element_type=jnp.float32, precision=precision)
    out = out + b2_ref[...]
    o_ref[...] = out.astype(o_ref.dtype)


def prepare_params(w1, b1, w2, b2, *, compute_dtype=jnp.bfloat16):
    """One-time weight preparation (do NOT call per forward).

    Transposes PyTorch-layout (out, in) weights to (in, out), zero-pads every
    feature dim to a multiple of 128 (lane-dense, math-preserving), and casts
    the matmul operands to `compute_dtype` (biases stay f32).
    """
    H, In = w1.shape
    Out = w2.shape[0]
    In_p, H_p, Out_p = (_round_up(d, _LANE) for d in (In, H, Out))

    w1t = jnp.pad(w1.T, ((0, In_p - In), (0, H_p - H))).astype(compute_dtype)
    w2t = jnp.pad(w2.T, ((0, H_p - H), (0, Out_p - Out))).astype(compute_dtype)
    b1p = jnp.pad(b1.astype(jnp.float32), (0, H_p - H)).reshape(1, H_p)
    b2p = jnp.pad(b2.astype(jnp.float32), (0, Out_p - Out)).reshape(1, Out_p)

    return {
        "w1t": jax.device_put(w1t), "b1p": jax.device_put(b1p),
        "w2t": jax.device_put(w2t), "b2p": jax.device_put(b2p),
        "dims": (In, H, Out), "compute_dtype": jnp.dtype(compute_dtype),
    }


def neural_net_forward(x, params, *, tm=None, out_dtype=None):
    """2-layer MLP forward (fc1 -> ReLU -> fc2) using prepared params.

    x: (B, In) array.  params: dict returned by prepare_params().
    out_dtype: output dtype (defaults to x.dtype; pass jnp.bfloat16 to halve writeback).
    """
    In, H, Out = params["dims"]
    compute_dtype = params["compute_dtype"]
    w1t, b1p, w2t, b2p = params["w1t"], params["b1p"], params["w2t"], params["b2p"]
    In_p, H_p = w1t.shape
    Out_p = w2t.shape[1]

    B = x.shape[0]
    assert x.shape[1] == In, f"expected input feature dim {In}, got {x.shape[1]}"
    out_dtype = jnp.dtype(out_dtype) if out_dtype is not None else x.dtype

    cap = _vmem_capacity_bytes()

    # Batch tile: split B into ~equal tiles no larger than max_tm (bounded padding
    # waste), aligned to the sublane quantum.
    if tm is None:
        max_tm = 1024 if cap >= (100 << 20) else 512   # bigger tiles on 128 MiB parts
        n_tiles = pl.cdiv(B, max_tm)
        tm = _round_up(pl.cdiv(B, n_tiles), _SUBLANE)
    B_p = _round_up(B, tm)
    grid = (B_p // tm,)

    # Per-call activation padding only (weights were prepared once, off the hot path).
    xp = jnp.pad(x, ((0, B_p - B), (0, In_p - In))).astype(compute_dtype)

    csize = jnp.dtype(compute_dtype).itemsize
    osize = jnp.dtype(out_dtype).itemsize
    w_bytes = (In_p * H_p + H_p * Out_p) * csize
    b_bytes = (H_p + Out_p) * 4
    if w_bytes + b_bytes > int(0.6 * cap):
        # TODO(synk): feature-dim tiling (grid over H/Out with f32 accumulator + pl.when
        # init/finalize) once the resident-weights design stops fitting VMEM.
        raise ValueError(
            f"Padded weights ({(w_bytes + b_bytes) >> 20} MiB) exceed the VMEM-resident "
            f"budget for this TPU generation ({cap >> 20} MiB VMEM)."
        )

    kernel = functools.partial(
        _mlp_kernel,
        compute_dtype=compute_dtype,
        precision=(jax.lax.Precision.HIGHEST if compute_dtype == jnp.float32 else None),
    )

    def run(single_buffer_weights):
        wbuf = 1 if single_buffer_weights else 2
        vmem_need = (
            wbuf * (w_bytes + b_bytes)          # resident weights + biases
            + 2 * tm * In_p * csize             # x double buffer
            + 2 * tm * Out_p * osize            # out double buffer
            + tm * H_p * 4 + tm * Out_p * 4     # f32 intermediates
        )
        # 1.5x headroom for Mosaic internal scratch; cap at 90% of physical VMEM.
        vmem_limit = int(min(max(1.5 * vmem_need, 16 << 20), 0.9 * cap))

        def const_spec(shape):
            idx = lambda i, _n=len(shape): (0,) * _n
            if single_buffer_weights:
                return pl.BlockSpec(shape, idx, pipeline_mode=pl.Buffered(1))
            return pl.BlockSpec(shape, idx)

        return pl.pallas_call(
            kernel,
            out_shape=jax.ShapeDtypeStruct((B_p, Out_p), out_dtype),
            grid=grid,
            in_specs=[
                pl.BlockSpec((tm, In_p), lambda i: (i, 0)),  # x: tiled over batch (2-buf)
                const_spec((In_p, H_p)),                     # w1: VMEM-resident
                const_spec((1, H_p)),                        # b1: VMEM-resident
                const_spec((H_p, Out_p)),                    # w2: VMEM-resident
                const_spec((1, Out_p)),                      # b2: VMEM-resident
            ],
            out_specs=pl.BlockSpec((tm, Out_p), lambda i: (i, 0)),
            compiler_params=pltpu.CompilerParams(
                dimension_semantics=("parallel",),  # shard batch tiles across TCs
                vmem_limit_bytes=vmem_limit,
            ),
        )(xp, w1t, b1p, w2t, b2p)

    if hasattr(pl, "Buffered"):
        try:
            out_padded = run(True)
        except Exception:
            # pipeline_mode/Buffered(1) not supported by this JAX build; use defaults.
            out_padded = run(False)
    else:
        out_padded = run(False)

    return out_padded[:B, :Out]


def init_params(key, input_size, hidden_size, output_size, dtype=jnp.float32):
    """Deterministic init mimicking nn.Linear's default U(-1/sqrt(fan_in), 1/sqrt(fan_in))."""
    k1, k2, k3, k4 = jax.random.split(key, 4)
    bound1 = 1.0 / (input_size ** 0.5)
    bound2 = 1.0 / (hidden_size ** 0.5)
    # Stored PyTorch-style (out_features, in_features).
    w1 = jax.random.uniform(k1, (hidden_size, input_size), dtype, -bound1, bound1)
    b1 = jax.random.uniform(k2, (hidden_size,), dtype, -bound1, bound1)
    w2 = jax.random.uniform(k3, (output_size, hidden_size), dtype, -bound2, bound2)
    b2 = jax.random.uniform(k4, (output_size,), dtype, -bound2, bound2)
    return w1, b1, w2, b2


if __name__ == "__main__":
    input_size, hidden_size, output_size = 32, 64, 16
    batch = 8

    key = jax.random.PRNGKey(0)
    kx, kp = jax.random.split(key)
    x = jax.random.normal(kx, (batch, input_size), jnp.float32)
    w1, b1, w2, b2 = init_params(kp, input_size, hidden_size, output_size)

    # Plain-JAX reference (same math as the PyTorch module).
    ref = jnp.maximum(x @ w1.T + b1, 0.0) @ w2.T + b2

    # f32 MXU operands (precision=HIGHEST): must match the reference tightly.
    params_f32 = prepare_params(w1, b1, w2, b2, compute_dtype=jnp.float32)
    out_f32 = jax.block_until_ready(neural_net_forward(x, params_f32))
    assert out_f32.shape == (batch, output_size)
    assert jnp.allclose(out_f32, ref, atol=1e-5, rtol=1e-5)

    # Default path: bf16 MXU operands with f32 accumulation (looser tolerance).
    params_bf16 = prepare_params(w1, b1, w2, b2)  # compute_dtype defaults to bfloat16
    out_bf16 = jax.block_until_ready(neural_net_forward(x, params_bf16))
    assert out_bf16.shape == (batch, output_size)
    assert jnp.allclose(out_bf16, ref, atol=5e-2, rtol=5e-2)

    print("KERNEL_OK")
</pallas_src>

<mosaic_0001>
module attributes {stable_mosaic.version = 11 : i64} {
  func.func @_mlp_kernel(%arg0: i32, %arg1: memref<16x128xf32, #tpu.memory_space<vmem>>, %arg2: memref<128x128xf32, #tpu.memory_space<vmem>>, %arg3: memref<1x128xf32, #tpu.memory_space<vmem>>, %arg4: memref<128x128xf32, #tpu.memory_space<vmem>>, %arg5: memref<1x128xf32, #tpu.memory_space<vmem>>, %arg6: memref<16x128xf32, #tpu.memory_space<vmem>>) attributes {dimension_semantics = [#tpu.dimension_semantics<parallel>], iteration_bounds = array<i64: 1>, scalar_prefetch = 0 : i64, scratch_operands = 0 : i64, tpu.core_type = #tpu.core_type<tc>, window_params = [{transform_indices = @transform_0, window_bounds = array<i64: 16, 128>}, {pipeline_mode = #tpu.pipeline_mode<synchronous>, transform_indices = @transform_1, window_bounds = array<i64: 128, 128>}, {pipeline_mode = #tpu.pipeline_mode<synchronous>, transform_indices = @transform_2, window_bounds = array<i64: 1, 128>}, {pipeline_mode = #tpu.pipeline_mode<synchronous>, transform_indices = @transform_3, window_bounds = array<i64: 128, 128>}, {pipeline_mode = #tpu.pipeline_mode<synchronous>, transform_indices = @transform_4, window_bounds = array<i64: 1, 128>}, {transform_indices = @transform_5, window_bounds = array<i64: 16, 128>}]} {
    %c0 = arith.constant 0 : index
    %c0_0 = arith.constant 0 : index
    %0 = vector.load %arg1[%c0, %c0_0] : memref<16x128xf32, #tpu.memory_space<vmem>>, vector<16x128xf32>
    %c0_1 = arith.constant 0 : index
    %c0_2 = arith.constant 0 : index
    %1 = vector.load %arg2[%c0_1, %c0_2] : memref<128x128xf32, #tpu.memory_space<vmem>>, vector<128x128xf32>
    %cst = arith.constant dense<0.000000e+00> : vector<16x128xf32>
    %2 = tpu.matmul %0, %1, %cst {dimension_numbers = #tpu.dot_dimension_numbers<[1], [0], [0], [1], [0, 0, 1, 1], [], []>, precision = #tpu.contract_precision<fp32>} : vector<16x128xf32>, vector<128x128xf32>, vector<16x128xf32> -> vector<16x128xf32>
    %c0_3 = arith.constant 0 : index
    %c0_4 = arith.constant 0 : index
    %3 = vector.load %arg3[%c0_3, %c0_4] : memref<1x128xf32, #tpu.memory_space<vmem>>, vector<1x128xf32>
    %4 = vector.broadcast %3 : vector<1x128xf32> to vector<16x128xf32>
    %5 = arith.addf %2, %4 : vector<16x128xf32>
    %cst_5 = arith.constant 0.000000e+00 : f32
    %6 = vector.broadcast %cst_5 : f32 to vector<16x128xf32>
    %7 = arith.maximumf %5, %6 : vector<16x128xf32>
    %c0_6 = arith.constant 0 : index
    %c0_7 = arith.constant 0 : index
    %8 = vector.load %arg4[%c0_6, %c0_7] : memref<128x128xf32, #tpu.memory_space<vmem>>, vector<128x128xf32>
    %cst_8 = arith.constant dense<0.000000e+00> : vector<16x128xf32>
    %9 = tpu.matmul %7, %8, %cst_8 {dimension_numbers = #tpu.dot_dimension_numbers<[1], [0], [0], [1], [0, 0, 1, 1], [], []>, precision = #tpu.contract_precision<fp32>} : vector<16x128xf32>, vector<128x128xf32>, vector<16x128xf32> -> vector<16x128xf32>
    %c0_9 = arith.constant 0 : index
    %c0_10 = arith.constant 0 : index
    %10 = vector.load %arg5[%c0_9, %c0_10] : memref<1x128xf32, #tpu.memory_space<vmem>>, vector<1x128xf32>
    %11 = vector.broadcast %10 : vector<1x128xf32> to vector<16x128xf32>
    %12 = arith.addf %9, %11 : vector<16x128xf32>
    %c0_11 = arith.constant 0 : index
    %c0_12 = arith.constant 0 : index
    %13 = vector.load %arg6[%c0_11, %c0_12] : memref<16x128xf32, #tpu.memory_space<vmem>>, vector<16x128xf32>
    tpu.vector_store %arg6[%c0_11, %c0_12], %12 {strides = array<i32>} : memref<16x128xf32, #tpu.memory_space<vmem>>, vector<16x128xf32>,
    return
  }
  func.func @transform_0(%arg0: i32) -> (i32, i32) {
    %c0_i32 = arith.constant 0 : i32
    %c0_i32_0 = arith.constant 0 : i32
    return %arg0, %c0_i32 : i32, i32
  }
  func.func @transform_1(%arg0: i32) -> (i32, i32) {
    %c0_i32 = arith.constant 0 : i32
    %c0_i32_0 = arith.constant 0 : i32
    %c0_i32_1 = arith.constant 0 : i32
    return %c0_i32, %c0_i32_0 : i32, i32
  }
  func.func @transform_2(%arg0: i32) -> (i32, i32) {
    %c0_i32 = arith.constant 0 : i32
    %c0_i32_0 = arith.constant 0 : i32
    %c0_i32_1 = arith.constant 0 : i32
    return %c0_i32, %c0_i32_0 : i32, i32
  }
  func.func @transform_3(%arg0: i32) -> (i32, i32) {
    %c0_i32 = arith.constant 0 : i32
    %c0_i32_0 = arith.constant 0 : i32
    %c0_i32_1 = arith.constant 0 : i32
    return %c0_i32, %c0_i32_0 : i32, i32
  }
  func.func @transform_4(%arg0: i32) -> (i32, i32) {
    %c0_i32 = arith.constant 0 : i32
    %c0_i32_0 = arith.constant 0 : i32
    %c0_i32_1 = arith.constant 0 : i32
    return %c0_i32, %c0_i32_0 : i32, i32
  }
  func.func @transform_5(%arg0: i32) -> (i32, i32) {
    %c0_i32 = arith.constant 0 : i32
    %c0_i32_0 = arith.constant 0 : i32
    return %arg0, %c0_i32 : i32, i32
  }
}

module attributes {stable_mosaic.version = 11 : i64} {
  func.func @_mlp_kernel(%arg0: i32, %arg1: memref<16x128xf32, #tpu.memory_space<vmem>>, %arg2: memref<128x128xf32, #tpu.memory_space<vmem>>, %arg3: memref<1x128xf32, #tpu.memory_space<vmem>>, %arg4: memref<128x128xf32, #tpu.memory_space<vmem>>, %arg5: memref<1x128xf32, #tpu.memory_space<vmem>>, %arg6: memref<16x128xf32, #tpu.memory_space<vmem>>) attributes {dimension_semantics = [#tpu.dimension_semantics<parallel>], iteration_bounds = array<i64: 1>, scalar_prefetch = 0 : i64, scratch_operands = 0 : i64, tpu.core_type = #tpu.core_type<tc>, window_params = [{transform_indices = @transform_0, window_bounds = array<i64: 16, 128>}, {pipeline_mode = #tpu.pipeline_mode<synchronous>, transform_indices = @transform_1, window_bounds = array<i64: 128, 128>}, {pipeline_mode = #tpu.pipeline_mode<synchronous>, transform_indices = @transform_2, window_bounds = array<i64: 1, 128>}, {pipeline_mode = #tpu.pipeline_mode<synchronous>, transform_indices = @transform_3, window_bounds = array<i64: 128, 128>}, {pipeline_mode = #tpu.pipeline_mode<synchronous>, transform_indices = @transform_4, window_bounds = array<i64: 1, 128>}, {transform_indices = @transform_5, window_bounds = array<i64: 16, 128>}]} {
    %c0 = arith.constant 0 : index
    %c0_0 = arith.constant 0 : index
    %0 = vector.load %arg1[%c0, %c0_0] : memref<16x128xf32, #tpu.memory_space<vmem>>, vector<16x128xf32>
    %c0_1 = arith.constant 0 : index
    %c0_2 = arith.constant 0 : index
    %1 = vector.load %arg2[%c0_1, %c0_2] : memref<128x128xf32, #tpu.memory_space<vmem>>, vector<128x128xf32>
    %cst = arith.constant dense<0.000000e+00> : vector<16x128xf32>
    %2 = tpu.matmul %0, %1, %cst {dimension_numbers = #tpu.dot_dimension_numbers<[1], [0], [0], [1], [0, 0, 1, 1], [], []>, precision = #tpu.contract_precision<fp32>} : vector<16x128xf32>, vector<128x128xf32>, vector<16x128xf32> -> vector<16x128xf32>
    %c0_3 = arith.constant 0 : index
    %c0_4 = arith.constant 0 : index
    %3 = vector.load %arg3[%c0_3, %c0_4] : memref<1x128xf32, #tpu.memory_space<vmem>>, vector<1x128xf32>
    %4 = vector.broadcast %3 : vector<1x128xf32> to vector<16x128xf32>
    %5 = arith.addf %2, %4 : vector<16x128xf32>
    %cst_5 = arith.constant 0.000000e+00 : f32
    %6 = vector.broadcast %cst_5 : f32 to vector<16x128xf32>
    %7 = arith.maximumf %5, %6 : vector<16x128xf32>
    %c0_6 = arith.constant 0 : index
    %c0_7 = arith.constant 0 : index
    %8 = vector.load %arg4[%c0_6, %c0_7] : memref<128x128xf32, #tpu.memory_space<vmem>>, vector<128x128xf32>
    %cst_8 = arith.constant dense<0.000000e+00> : vector<16x128xf32>
    %9 = tpu.matmul %7, %8, %cst_8 {dimension_numbers = #tpu.dot_dimension_numbers<[1], [0], [0], [1], [0, 0, 1, 1], [], []>, precision = #tpu.contract_precision<fp32>} : vector<16x128xf32>, vector<128x128xf32>, vector<16x128xf32> -> vector<16x128xf32>
    %c0_9 = arith.constant 0 : index
    %c0_10 = arith.constant 0 : index
    %10 = vector.load %arg5[%c0_9, %c0_10] : memref<1x128xf32, #tpu.memory_space<vmem>>, vector<1x128xf32>
    %11 = vector.broadcast %10 : vector<1x128xf32> to vector<16x128xf32>
    %12 = arith.addf %9, %11 : vector<16x128xf32>
    %c0_11 = arith.constant 0 : index
    %c0_12 = arith.constant 0 : index
    %13 = vector.load %arg6[%c0_11, %c0_12] : memref<16x128xf32, #tpu.memory_space<vmem>>, vector<16x128xf32>
    tpu.vector_store %arg6[%c0_11, %c0_12], %12 {strides = array<i32>} : memref<16x128xf32, #tpu.memory_space<vmem>>, vector<16x128xf32>,
    return
  }
  func.func @transform_0(%arg0: i32) -> (i32, i32) {
    %c0_i32 = arith.constant 0 : i32
    %c0_i32_0 = arith.constant 0 : i32
    return %arg0, %c0_i32 : i32, i32
  }
  func.func @transform_1(%arg0: i32) -> (i32, i32) {
    %c0_i32 = arith.constant 0 : i32
    %c0_i32_0 = arith.constant 0 : i32
    %c0_i32_1 = arith.constant 0 : i32
    return %c0_i32, %c0_i32_0 : i32, i32
  }
  func.func @transform_2(%arg0: i32) -> (i32, i32) {
    %c0_i32 = arith.constant 0 : i32
    %c0_i32_0 = arith.constant 0 : i32
    %c0_i32_1 = arith.constant 0 : i32
    return %c0_i32, %c0_i32_0 : i32, i32
  }
  func.func @transform_3(%arg0: i32) -> (i32, i32) {
    %c0_i32 = arith.constant 0 : i32
    %c0_i32_0 = arith.constant 0 : i32
    %c0_i32_1 = arith.constant 0 : i32
    return %c0_i32, %c0_i32_0 : i32, i32
  }
  func.func @transform_4(%arg0: i32) -> (i32, i32) {
    %c0_i32 = arith.constant 0 : i32
    %c0_i32_0 = arith.constant 0 : i32
    %c0_i32_1 = arith.constant 0 : i32
    return %c0_i32, %c0_i32_0 : i32, i32
  }
  func.func @transform_5(%arg0: i32) -> (i32, i32) {
    %c0_i32 = arith.constant 0 : i32
    %c0_i32_0 = arith.constant 0 : i32
    return %arg0, %c0_i32 : i32, i32
  }
}

</mosaic_0001>

<bundles_post_ra>
// kernel: tpu_custom_call.1
= control target key start
LH: loop header
LB: loop body
LE: loop exit
PB: predicated region body
PF: predicated region fallthrough
CT: control target
= control target key end

     0   :  { %10 = vsyncpa [#allocation3], 0  ;;  %s2987_s0 = inlined_call_operand.hbm [shape: f32[16,128], index: 0, kind: input, shape index: {}]   ;;  %s2988_s1 = inlined_call_operand.hbm [shape: f32[128,128], index: 1, kind: input, shape index: {}]   ;;  %s2989_s2 = inlined_call_operand.vmem [shape: f32[1,128], index: 2, kind: input, shape index: {}]   ;;  %s2990_s3 = inlined_call_operand.hbm [shape: f32[128,128], index: 3, kind: input, shape index: {}]   ;;  %s2991_s4 = inlined_call_operand.vmem [shape: f32[1,128], index: 4, kind: input, shape index: {}]   ;;  %s2992_s5 = inlined_call_operand.hbm [shape: f32[16,128], index: 5, kind: output, shape index: {}]  }
   0x1   :  { %11 = vsyncpa [#allocation6], 0 }
   0x2   :  { %12 = vsyncpa [#allocation4], 0  ;;  %s2230_s18 = smov [#allocation5]   ;;  %s2231_s20 = smov [#allocation2]  }
   0x3   :  { %s30_s19 = sshll.u32 %s2230_s18, 4  ;;  %s18_s21 = sshll.u32 %s2231_s20, 4  ;;  %s31_s19 = int_to_ptr.vmem [resolvable:$true] %s30_s19  ;;  %s19_s21 = int_to_ptr.vmem [resolvable:$true] %s18_s21 }
   0x4   :  { %s2152_s22 = scalar_lea.vmem %s31_s19, 2048  ;;  %p2157_p1 = scmp.lt.s32.totalorder %s31_s19, %s31_s19 }
   0x5   :  { %p2153_p0 = scmp.ne.s32.totalorder %s31_s19, %s2152_s22  ;;  %p2158_p2 = scmp.lt.s32.totalorder %s2152_s22, %s2152_s22 }
   0x7   :  { %p2159_p3 = por %p2158_p2, %p2157_p1 }
   0x9   :  { %p2160_p4 = pnand %p2159_p3, %p2153_p0 }
   0xb   :  { %2163 = shalt.err (!%p2160_p4)
}
   0xc   :  { %s2232_s23 = smov 128   ;;  %s2233_s24 = smov 8  }
   0xd   :  { %36 = dma.hbm_to_vmem [thread:$0]  %s2988_s1, 2048, %s31_s19, [#allocation6], %s2232_s23, %s2232_s23, %s2233_s24  }
   0xe   :  { %s2172_s27 = scalar_lea.vmem %s19_s21, 256  ;;  %p2177_p6 = scmp.lt.s32.totalorder %s19_s21, %s19_s21 }
   0xf   :  { %p2173_p5 = scmp.ne.s32.totalorder %s19_s21, %s2172_s27  ;;  %p2178_p7 = scmp.lt.s32.totalorder %s2172_s27, %s2172_s27 }
  0x11   :  { %p2179_p8 = por %p2178_p7, %p2177_p6 }
  0x13   :  { %p2180_p9 = pnand %p2179_p8, %p2173_p5 }
  0x15   :  { %2183 = shalt.err (!%p2180_p9)
}
  0x16   :  { %24 = dma.hbm_to_vmem [thread:$0]  %s2987_s0, 256, %s19_s21, [#allocation3], %s2232_s23, %s2232_s23, %s2233_s24  }
  0x17   :  { %s2234_s30 = smov [#allocation7]  }
  0x18   :  { %s44_s6 = sshll.u32 %s2234_s30, 4  ;;  %s45_s6 = int_to_ptr.vmem [resolvable:$true] %s44_s6 }
  0x19   :  { %s2192_s7 = scalar_lea.vmem %s45_s6, 2048  ;;  %p2197_p11 = scmp.lt.s32.totalorder %s45_s6, %s45_s6 }
  0x1a   :  { %p2193_p10 = scmp.ne.s32.totalorder %s45_s6, %s2192_s7  ;;  %p2198_p12 = scmp.lt.s32.totalorder %s2192_s7, %s2192_s7 }
  0x1c   :  { %p2199_p13 = por %p2198_p12, %p2197_p11 }
  0x1e   :  { %p2200_p0 = pnand %p2199_p13, %p2193_p10 }
  0x20   :  { %2203 = shalt.err (!%p2200_p0)
}
  0x21   :  { %50 = dma.hbm_to_vmem [thread:$0]  %s2990_s3, 2048, %s45_s6, [#allocation6], %s2232_s23, %s2232_s23, %s2233_s24  }
  0x22   :  { %2224 = dma.done.wait [#allocation3], 256  }
  0x23   :  { %2225 = vsyncadd [#allocation3], 4294967040 }
  0x24   :  { %2226 = dma.done.wait [#allocation6], 4096  }
  0x25   :  { %2227 = vsyncadd [#allocation6], 4294963200  ;;  %v79_v0 = vld [vmem:[#allocation5 + $0x78] sm:$0xff]  ;;  %v78_v1 = vld [vmem:[#allocation5 + $0x70] sm:$0xff] }
  0x26   :  { %v77_v2 = vld [vmem:[#allocation5 + $0x68] sm:$0xff]  ;;  %v2284_v3 = vand.u32 4294901760, %v79_v0  ;;  %v2286_v4 = vand.u32 4294901760, %v78_v1  ;;  %v76_v6 = vld [vmem:[#allocation5 + $0x60] sm:$0xff]  ;;  %v75_v7 = vld [vmem:[#allocation5 + $0x58] sm:$0xff] }
  0x27   :  { %v2288_v5 = vand.u32 4294901760, %v77_v2  ;;  %v74_v8 = vld [vmem:[#allocation5 + $0x50] sm:$0xff]  ;;  %v2290_v9 = vand.u32 4294901760, %v76_v6  ;;  %v2292_v10 = vand.u32 4294901760, %v75_v7  ;;  %v73_v12 = vld [vmem:[#allocation5 + $0x48] sm:$0xff]  ;;  %v72_v13 = vld [vmem:[#allocation5 + $0x40] sm:$0xff] }
  0x28   :  { %v2294_v11 = vand.u32 4294901760, %v74_v8  ;;  %1718 = vmatprep.subr.mxu0 %v2284_v3  ;;  %v2298_v14 = vsub.f32 %v79_v0, %v2284_v3  ;;  %v2301_v15 = vsub.f32 %v78_v1, %v2286_v4  ;;  %v2303_v16 = vand.u32 4294901760, %v73_v12  ;;  %v71_v18 = vld [vmem:[#allocation5 + $0x38] sm:$0xff]  ;;  %v70_v25 = vld [vmem:[#allocation5 + $0x30] sm:$0xff]  ;;  %v69_v35 = vld [vmem:[#allocation5 + $0x28] sm:$0xff] }
  0x29   :  { %v2306_v17 = vsub.f32 %v77_v2, %v2288_v5  ;;  %1719 = vmatpush3.msra.mxu0 %v2284_v3  ;;  %v2310_v19 = vsub.f32 %v76_v6, %v2290_v9  ;;  %v2313_v20 = vsub.f32 %v75_v7, %v2292_v10  ;;  %v2325_v24 = vand.u32 4294901760, %v72_v13  ;;  %v68_v40 = vld [vmem:[#allocation5 + $0x20] sm:$0xff]  ;;  %v67_v48 = vld [vmem:[#allocation5 + $0x18] sm:$0xff]  ;;  %v62_v49 = vld [vmem:[#allocation2] sm:$0xff] }
  0x2a   :  { %1720 = vmatprep.subr.mxu0 %v2286_v4  ;;  %v2317_v21 = vand.u32 4294901760, %v2298_v14  ;;  %v2320_v22 = vand.u32 4294901760, %v2301_v15  ;;  %v2331_v27 = vand.u32 4294901760, %v71_v18  ;;  %v2337_v29 = vsub.f32 %v74_v8, %v2294_v11  ;;  %v63_v54 = vld [vmem:[#allocation2 + $0x8] sm:$0xff]  ;;  %v66_v59 = vld [vmem:[#allocation5 + $0x10] sm:$0xff]  ;;  %v65_v2 = vld [vmem:[#allocation5 + $0x8] sm:$0xff] }
  0x2b   :  { %v2323_v23 = vand.u32 4294901760, %v2306_v17  ;;  %1721 = vmatpush3.msra.mxu0 %v2286_v4  ;;  %v2329_v26 = vand.u32 4294901760, %v2310_v19  ;;  %v2334_v28 = vand.u32 4294901760, %v2313_v20  ;;  %v2347_v33 = vsub.f32 %v73_v12, %v2303_v16 }
  0x2c   :  { %1722 = vmatprep.subr.mxu0 %v2288_v5  ;;  %v192_v30 = vsub.f32 %v2298_v14, %v2317_v21  ;;  %v199_v31 = vsub.f32 %v2301_v15, %v2320_v22  ;;  %v2350_v34 = vand.u32 4294901760, %v70_v25  ;;  %v2356_v39 = vand.u32 4294901760, %v2337_v29 }
  0x2d   :  { %v206_v32 = vsub.f32 %v2306_v17, %v2323_v23  ;;  %1723 = vmatpush3.msra.mxu0 %v2288_v5  ;;  %v213_v38 = vsub.f32 %v2310_v19, %v2329_v26  ;;  %v220_v41 = vsub.f32 %v2313_v20, %v2334_v28  ;;  %v2362_v42 = vand.u32 4294901760, %v2347_v33 }
  0x2e   :  { %1724 = vmatprep.subr.mxu0 %v2290_v9  ;;  %v193_v36 = vand.u32 4294901760, %v192_v30  ;;  %v200_v37 = vand.u32 4294901760, %v199_v31  ;;  %v2365_v43 = vsub.f32 %v72_v13, %v2325_v24  ;;  %v2368_v45 = vand.u32 4294901760, %v69_v35 }
  0x2f   :  { %1725 = vmatpush3.msra.mxu0 %v2290_v9  ;;  %v207_v44 = vand.u32 4294901760, %v206_v32  ;;  %v2371_v46 = vsub.f32 %v71_v18, %v2331_v27  ;;  %v2374_v47 = vand.u32 4294901760, %v68_v40  ;;  %v214_v50 = vand.u32 4294901760, %v213_v38  ;;  %v64_v18 = vld [vmem:[#allocation5] sm:$0xff] }
  0x30   :  { %1726 = vmatprep.subr.mxu0 %v2292_v10  ;;  %1753 = vmatprep.subr.mxu1 %v193_v36  ;;  %v227_v51 = vsub.f32 %v2337_v29, %v2356_v39  ;;  %v2380_v52 = vand.u32 4294901760, %v2365_v43  ;;  %v2383_v53 = vsub.f32 %v70_v25, %v2350_v34  ;;  %v221_v55 = vand.u32 4294901760, %v220_v41 }
  0x31   :  { %1727 = vmatpush3.msra.mxu0 %v2292_v10  ;;  %1754 = vmatpush3.msra.mxu1 %v193_v36  ;;  %v234_v56 = vsub.f32 %v2347_v33, %v2362_v42  ;;  %v2389_v57 = vand.u32 4294901760, %v67_v48  ;;  %v2392_v58 = vand.u32 4294901760, %v2371_v46  ;;  %v2395_v60 = vsub.f32 %v69_v35, %v2368_v45 }
  0x32   :  { %1728 = vmatprep.subr.mxu0 %v2294_v11  ;;  %1755 = vmatprep.subr.mxu1 %v200_v37  ;;  %v2397_v61 = vand.u32 4294901760, %v62_v49  ;;  %v2400_v62 = vand.u32 4294901760, %v63_v54  ;;  %v228_v63 = vand.u32 4294901760, %v227_v51  ;;  %v241_v0 = vsub.f32 %v2365_v43, %v2380_v52 }
  0x33   :  { %1729 = vmatpush3.msra.mxu0 %v2294_v11  ;;  %1756 = vmatpush3.msra.mxu1 %v200_v37  ;;  %v2406_v1 = vand.u32 4294901760, %v2383_v53  ;;  %v2409_v6 = vsub.f32 %v68_v40, %v2374_v47  ;;  %v235_v7 = vand.u32 4294901760, %v234_v56  ;;  %v2412_v8 = vand.u32 4294901760, %v66_v59 }
  0x34   :  { %1730 = vmatprep.subr.mxu0 %v2303_v16  ;;  %1757 = vmatprep.subr.mxu1 %v207_v44  ;;  %v248_v12 = vsub.f32 %v2371_v46, %v2392_v58  ;;  %v2418_v13 = vand.u32 4294901760, %v2395_v60  ;;  %v2421_v25 = vsub.f32 %v62_v49, %v2397_v61  ;;  %v2424_v30 = vsub.f32 %v67_v48, %v2389_v57 }
  0x35   :  { %1731 = vmatpush3.msra.mxu0 %v2303_v16  ;;  %1758 = vmatpush3.msra.mxu1 %v207_v44  ;;  %v2427_v31 = vand.u32 4294901760, %v65_v2  ;;  %v2430_v32 = vsub.f32 %v63_v54, %v2400_v62  ;;  %v242_v35 = vand.u32 4294901760, %v241_v0  ;;  %v255_v36 = vsub.f32 %v2383_v53, %v2406_v1 }
  0x36   :  { %1732 = vmatprep.subr.mxu0 %v2325_v24  ;;  %1759 = vmatprep.subr.mxu1 %v214_v50  ;;  %v2436_v37 = vand.u32 4294901760, %v2409_v6  ;;  %v2439_v38 = vand.u32 4294901760, %v64_v18  ;;  %v2442_v40 = vsub.f32 %v66_v59, %v2412_v8  ;;  %v249_v41 = vand.u32 4294901760, %v248_v12 }
  0x37   :  { %1733 = vmatpush3.msra.mxu0 %v2325_v24  ;;  %1760 = vmatpush3.msra.mxu1 %v214_v50  ;;  %v262_v44 = vsub.f32 %v2395_v60, %v2418_v13  ;;  %v2994_v48 = vand.u32 4294901760, %v2421_v25  ;;  %v2449_v49 = vand.u32 4294901760, %v2424_v30  ;;  %v2993_v50 = vand.u32 4294901760, %v2430_v32 }
  0x38   :  { %1734 = vmatprep.subr.mxu0 %v2331_v27  ;;  %1761 = vmatprep.subr.mxu1 %v221_v55  ;;  %v2454_v51 = vsub.f32 %v65_v2, %v2427_v31  ;;  %v256_v54 = vand.u32 4294901760, %v255_v36  ;;  %v2461_v56 = vand.u32 4294901760, %v2442_v40  ;;  %v2464_v59 = vsub.f32 %v64_v18, %v2439_v38 }
  0x39   :  { %1735 = vmatpush3.msra.mxu0 %v2331_v27  ;;  %1762 = vmatpush3.msra.mxu1 %v221_v55  ;;  %v269_v55 = vsub.f32 %v2409_v6, %v2436_v37  ;;  %v171_v0 = vsub.f32 %v2421_v25, %v2994_v48  ;;  %v276_v2 = vsub.f32 %v2424_v30, %v2449_v49 }
  0x3a   :  { %1736 = vmatprep.subr.mxu0 %v2350_v34  ;;  %1763 = vmatprep.subr.mxu1 %v228_v63  ;;  %v2477_v12 = vand.u32 4294901760, %v2454_v51  ;;  %v2484_v36 = vand.u32 4294901760, %v2464_v59 }
  0x3b   :  { %1737 = vmatpush3.msra.mxu0 %v2350_v34  ;;  %1764 = vmatpush3.msra.mxu1 %v228_v63  ;;  %v263_v63 = vand.u32 4294901760, %v262_v44  ;;  %v270_v18 = vand.u32 4294901760, %v269_v55  ;;  %v277_v44 = vand.u32 4294901760, %v276_v2 }
  0x3c   :  { %1738 = vmatprep.subr.mxu0 %v2368_v45  ;;  %1765 = vmatprep.subr.mxu1 %v235_v7  ;;  %v290_v55 = vsub.f32 %v2454_v51, %v2477_v12  ;;  %v297_v48 = vsub.f32 %v2464_v59, %v2484_v36 }
  0x3d   :  { %1739 = vmatpush3.msra.mxu0 %v2368_v45  ;;  %1766 = vmatpush3.msra.mxu1 %v235_v7  ;;  %v181_v7 = vsub.f32 %v2430_v32, %v2993_v50 }
  0x3e   :  { %1740 = vmatprep.subr.mxu0 %v2374_v47  ;;  %1767 = vmatprep.subr.mxu1 %v242_v35 }
  0x3f   :  { %1741 = vmatpush3.msra.mxu0 %v2374_v47  ;;  %1768 = vmatpush3.msra.mxu1 %v242_v35  ;;  %v283_v35 = vsub.f32 %v2442_v40, %v2461_v56  ;;  %v182_v50 = vand.u32 4294901760, %v181_v7 }
  0x40   :  { %1742 = vmatprep.subr.mxu0 %v2389_v57  ;;  %1769 = vmatprep.subr.mxu1 %v249_v41 }
  0x41   :  { %1743 = vmatpush3.msra.mxu0 %v2389_v57  ;;  %1770 = vmatpush3.msra.mxu1 %v249_v41  ;;  %v172_v41 = vand.u32 4294901760, %v171_v0  ;;  %v298_v0 = vand.u32 4294901760, %v297_v48  ;;  %v780_v48 = vld [vmem:[#allocation7 + $0x38] sm:$0xff] }
  0x42   :  { %1744 = vmatprep.subr.mxu0 %v2412_v8  ;;  %1771 = vmatprep.subr.mxu1 %v256_v54 }
  0x43   :  { %1745 = vmatpush3.msra.mxu0 %v2412_v8  ;;  %1772 = vmatpush3.msra.mxu1 %v256_v54  ;;  %v284_v54 = vand.u32 4294901760, %v283_v35 }
  0x44   :  { %1746 = vmatprep.subr.mxu0 %v2427_v31  ;;  %1773 = vmatprep.subr.mxu1 %v263_v63 }
  0x45   :  { %1747 = vmatpush3.msra.mxu0 %v2427_v31  ;;  %1774 = vmatpush3.msra.mxu1 %v263_v63  ;;  %v291_v63 = vand.u32 4294901760, %v290_v55 }
  0x46   :  { %1748 = vmatprep.subr.mxu0 %v2439_v38  ;;  %1775 = vmatprep.subr.mxu1 %v270_v18 }
  0x47   :  { %1749 = vmatpush3.msra.mxu0 %v2439_v38  ;;  %1776 = vmatpush3.msra.mxu1 %v270_v18 }
  0x48   :  { %1750 = vmatprep.mubr.f32.mxu0 %v172_v41  ;;  %1777 = vmatprep.subr.mxu1 %v277_v44 }
  0x49   :  { %1788 = vmatprep.subr.mxu0 %v2298_v14  ;;  %1751 = vmatmul.mubr.f32.vlgmr.msra.gmra.mxu0 %v182_v50 }
  0x4a   :  { %1778 = vmatpush3.msra.mxu1 %v277_v44  ;;  %1789 = vmatpush3.msra.mxu0 %v2298_v14  ;;  %v3015_v14 = vand.u32 4294901760, %v2421_v25  ;;  %v777_v44 = vld [vmem:[#allocation7 + $0x20] sm:$0xff] }
  0x4b   :  { %1779 = vmatprep.subr.mxu1 %v284_v54  ;;  %1790 = vmatprep.subr.mxu0 %v2301_v15 }
  0x4c   :  { %1780 = vmatpush3.msra.mxu1 %v284_v54  ;;  %1791 = vmatpush3.msra.mxu0 %v2301_v15  ;;  %v3016_v15 = vand.u32 4294901760, %v2430_v32 }
  0x4d   :  { %1781 = vmatprep.subr.mxu1 %v291_v63  ;;  %1792 = vmatprep.subr.mxu0 %v2306_v17 }
  0x4e   :  { %1782 = vmatpush3.msra.mxu1 %v291_v63  ;;  %1793 = vmatpush3.msra.mxu0 %v2306_v17  ;;  %v784_v17 = vld [vmem:[#allocation7 + $0x58] sm:$0xff] }
  0x4f   :  { %1783 = vmatprep.subr.mxu1 %v298_v0  ;;  %1794 = vmatprep.subr.mxu0 %v2310_v19 }
  0x50   :  { %1784 = vmatpush3.msra.mxu1 %v298_v0  ;;  %1785 = vmatprep.mubr.f32.mxu1 %v2397_v61  ;;  %v2757_v0 = vand.u32 4294901760, %v777_v44 }
  0x51   :  { %1795 = vmatpush3.msra.mxu0 %v2310_v19  ;;  %1786 = vmatmul.mubr.f32.vlgmr.msra.gmra.mxu1 %v2400_v62 }
  0x52   :  { %1796 = vmatprep.subr.mxu0 %v2313_v20  ;;  %1823 = vmatprep.subr.mxu1 %v2284_v3 }
  0x53   :  { %1797 = vmatpush3.msra.mxu0 %v2313_v20  ;;  %1824 = vmatpush3.msra.mxu1 %v2284_v3 }
  0x54   :  { %1798 = vmatprep.subr.mxu0 %v2337_v29  ;;  %1825 = vmatprep.subr.mxu1 %v2286_v4 }
  0x55   :  { %1799 = vmatpush3.msra.mxu0 %v2337_v29  ;;  %1826 = vmatpush3.msra.mxu1 %v2286_v4 }
  0x56   :  { %1800 = vmatprep.subr.mxu0 %v2347_v33  ;;  %1827 = vmatprep.subr.mxu1 %v2288_v5 }
  0x57   :  { %1801 = vmatpush3.msra.mxu0 %v2347_v33  ;;  %1828 = vmatpush3.msra.mxu1 %v2288_v5 }
  0x58   :  { %1802 = vmatprep.subr.mxu0 %v2365_v43  ;;  %1829 = vmatprep.subr.mxu1 %v2290_v9 }
  0x59   :  { %1803 = vmatpush3.msra.mxu0 %v2365_v43  ;;  %1830 = vmatpush3.msra.mxu1 %v2290_v9 }
  0x5a   :  { %1804 = vmatprep.subr.mxu0 %v2371_v46  ;;  %1831 = vmatprep.subr.mxu1 %v2292_v10 }
  0x5b   :  { %1805 = vmatpush3.msra.mxu0 %v2371_v46  ;;  %1832 = vmatpush3.msra.mxu1 %v2292_v10 }
  0x5c   :  { %1806 = vmatprep.subr.mxu0 %v2383_v53  ;;  %1833 = vmatprep.subr.mxu1 %v2294_v11 }
  0x5d   :  { %1807 = vmatpush3.msra.mxu0 %v2383_v53  ;;  %1834 = vmatpush3.msra.mxu1 %v2294_v11 }
  0x5e   :  { %1808 = vmatprep.subr.mxu0 %v2395_v60  ;;  %1835 = vmatprep.subr.mxu1 %v2303_v16 }
  0x5f   :  { %1809 = vmatpush3.msra.mxu0 %v2395_v60  ;;  %1836 = vmatpush3.msra.mxu1 %v2303_v16 }
  0x60   :  { %1810 = vmatprep.subr.mxu0 %v2409_v6  ;;  %1837 = vmatprep.subr.mxu1 %v2325_v24 }
  0x61   :  { %1811 = vmatpush3.msra.mxu0 %v2409_v6  ;;  %1838 = vmatpush3.msra.mxu1 %v2325_v24 }
  0x62   :  { %1812 = vmatprep.subr.mxu0 %v2424_v30  ;;  %1839 = vmatprep.subr.mxu1 %v2331_v27 }
  0x63   :  { %1813 = vmatpush3.msra.mxu0 %v2424_v30  ;;  %1840 = vmatpush3.msra.mxu1 %v2331_v27 }
  0x64   :  { %1814 = vmatprep.subr.mxu0 %v2442_v40  ;;  %1841 = vmatprep.subr.mxu1 %v2350_v34 }
  0x65   :  { %1815 = vmatpush3.msra.mxu0 %v2442_v40  ;;  %1842 = vmatpush3.msra.mxu1 %v2350_v34 }
  0x66   :  { %1816 = vmatprep.subr.mxu0 %v2454_v51  ;;  %1843 = vmatprep.subr.mxu1 %v2368_v45 }
  0x67   :  { %1817 = vmatpush3.msra.mxu0 %v2454_v51  ;;  %1844 = vmatpush3.msra.mxu1 %v2368_v45  ;;  %v2728_v51 = vand.u32 4294901760, %v780_v48 }
  0x68   :  { %1818 = vmatprep.subr.mxu0 %v2464_v59  ;;  %1845 = vmatprep.subr.mxu1 %v2374_v47 }
  0x69   :  { %1819 = vmatpush3.msra.mxu0 %v2464_v59  ;;  %1820 = vmatprep.mubr.f32.mxu0 %v2421_v25  ;;  %v2733_v2 = vsub.f32 %v780_v48, %v2728_v51 }
  0x6a   :  { %1846 = vmatpush3.msra.mxu1 %v2374_v47  ;;  %1821 = vmatmul.mubr.f32.vlgmr.msra.gmra.mxu0 %v2430_v32 }
  0x6b   :  { %1847 = vmatprep.subr.mxu1 %v2389_v57  ;;  %1858 = vmatprep.subr.mxu0 %v2317_v21  ;;  %v2740_v35 = vand.u32 4294901760, %v2733_v2 }
  0x6c   :  { %1848 = vmatpush3.msra.mxu1 %v2389_v57  ;;  %1859 = vmatpush3.msra.mxu0 %v2317_v21  ;;  %v2646_v21 = vand.u32 4294901760, %v784_v17 }
  0x6d   :  { %1849 = vmatprep.subr.mxu1 %v2412_v8  ;;  %1860 = vmatprep.subr.mxu0 %v2320_v22  ;;  %3019 = vst [vmem:[#allocation14_spill] sm:$0xff] %v2740_v35  ;;  %v957_v55 = vsub.f32 %v2733_v2, %v2740_v35 }
  0x6e   :  { %1850 = vmatpush3.msra.mxu1 %v2412_v8  ;;  %1861 = vmatpush3.msra.mxu0 %v2320_v22  ;;  %v783_v22 = vld [vmem:[#allocation7 + $0x50] sm:$0xff] }
  0x6f   :  { %1851 = vmatprep.subr.mxu1 %v2427_v31  ;;  %1862 = vmatprep.subr.mxu0 %v2323_v23 }
  0x70   :  { %1852 = vmatpush3.msra.mxu1 %v2427_v31  ;;  %1863 = vmatpush3.msra.mxu0 %v2323_v23  ;;  %v782_v23 = vld [vmem:[#allocation7 + $0x48] sm:$0xff] }
  0x71   :  { %1853 = vmatprep.subr.mxu1 %v2439_v38  ;;  %1864 = vmatprep.subr.mxu0 %v2329_v26  ;;  %v2658_v29 = vand.u32 4294901760, %v782_v23 }
  0x72   :  { %1854 = vmatpush3.msra.mxu1 %v2439_v38  ;;  %1855 = vmatprep.mubr.f32.mxu1 %v3015_v14  ;;  %v776_v14 = vld [vmem:[#allocation7 + $0x18] sm:$0xff] }
  0x73   :  { %1865 = vmatpush3.msra.mxu0 %v2329_v26  ;;  %1856 = vmatmul.mubr.f32.vlgmr.msra.gmra.mxu1 %v3016_v15  ;;  %v958_v15 = vand.u32 4294901760, %v957_v55 }
  0x74   :  { %1866 = vmatprep.subr.mxu0 %v2334_v28  ;;  %1893 = vmatprep.subr.mxu1 %v2284_v3 }
  0x75   :  { %1867 = vmatpush3.msra.mxu0 %v2334_v28  ;;  %1894 = vmatpush3.msra.mxu1 %v2284_v3  ;;  %v788_v3 = vld [vmem:[#allocation7 + $0x78] sm:$0xff]  ;;  %v2656_v28 = vand.u32 4294901760, %v783_v22 }
  0x76   :  { %1868 = vmatprep.subr.mxu0 %v2356_v39  ;;  %1895 = vmatprep.subr.mxu1 %v2286_v4 }
  0x77   :  { %1869 = vmatpush3.msra.mxu0 %v2356_v39  ;;  %1896 = vmatpush3.msra.mxu1 %v2286_v4  ;;  %v2634_v4 = vand.u32 4294901760, %v788_v3  ;;  %v2667_v39 = vsub.f32 %v784_v17, %v2646_v21  ;;  %v2678_v46 = vsub.f32 %v783_v22, %v2656_v28  ;;  %v775_v17 = vld [vmem:[#allocation7 + $0x10] sm:$0xff] }
  0x78   :  { %1870 = vmatprep.subr.mxu0 %v2362_v42  ;;  %1897 = vmatprep.subr.mxu1 %v2288_v5 }
  0x79   :  { %1871 = vmatpush3.msra.mxu0 %v2362_v42  ;;  %1898 = vmatpush3.msra.mxu1 %v2288_v5  ;;  %v787_v5 = vld [vmem:[#allocation7 + $0x70] sm:$0xff] }
  0x7a   :  { %1872 = vmatprep.subr.mxu0 %v2380_v52  ;;  %1899 = vmatprep.subr.mxu1 %v2290_v9 }
  0x7b   :  { %1873 = vmatpush3.msra.mxu0 %v2380_v52  ;;  %1900 = vmatpush3.msra.mxu1 %v2290_v9  ;;  %v2637_v9 = vsub.f32 %v788_v3, %v2634_v4 }
  0x7c   :  { %1874 = vmatprep.subr.mxu0 %v2392_v58  ;;  %1901 = vmatprep.subr.mxu1 %v2292_v10 }
  0x7d   :  { %1875 = vmatpush3.msra.mxu0 %v2392_v58  ;;  %1902 = vmatpush3.msra.mxu1 %v2292_v10  ;;  %v2639_v10 = vand.u32 4294901760, %v787_v5  ;;  %v2650_v26 = vand.u32 4294901760, %v2637_v9 }
  0x7e   :  { %1876 = vmatprep.subr.mxu0 %v2406_v1  ;;  %1903 = vmatprep.subr.mxu1 %v2294_v11 }
  0x7f   :  { %1877 = vmatpush3.msra.mxu0 %v2406_v1  ;;  %1904 = vmatpush3.msra.mxu1 %v2294_v11  ;;  %v786_v11 = vld [vmem:[#allocation7 + $0x68] sm:$0xff]  ;;  %v901_v43 = vsub.f32 %v2637_v9, %v2650_v26 }
  0x80   :  { %1878 = vmatprep.subr.mxu0 %v2418_v13  ;;  %1905 = vmatprep.subr.mxu1 %v2303_v16  ;;  %v2642_v19 = vand.u32 4294901760, %v786_v11 }
  0x81   :  { %1879 = vmatpush3.msra.mxu0 %v2418_v13  ;;  %1906 = vmatpush3.msra.mxu1 %v2303_v16  ;;  %v785_v16 = vld [vmem:[#allocation7 + $0x60] sm:$0xff]  ;;  %v902_v58 = vand.u32 4294901760, %v901_v43  ;;  %v2778_v43 = vand.u32 4294901760, %v775_v17 }
  0x82   :  { %1880 = vmatprep.subr.mxu0 %v2436_v37  ;;  %1907 = vmatprep.subr.mxu1 %v2325_v24  ;;  %v2644_v20 = vand.u32 4294901760, %v785_v16  ;;  %v2661_v33 = vsub.f32 %v786_v11, %v2642_v19  ;;  %v2767_v11 = vsub.f32 %v777_v44, %v2757_v0 }
  0x83   :  { %1881 = vmatpush3.msra.mxu0 %v2436_v37  ;;  %1908 = vmatpush3.msra.mxu1 %v2325_v24  ;;  %v781_v24 = vld [vmem:[#allocation7 + $0x40] sm:$0xff] }
  0x84   :  { %1882 = vmatprep.subr.mxu0 %v2449_v49  ;;  %1909 = vmatprep.subr.mxu1 %v2331_v27  ;;  %v2670_v42 = vand.u32 4294901760, %v781_v24  ;;  %v2685_v52 = vand.u32 4294901760, %v2661_v33 }
  0x85   :  { %1883 = vmatpush3.msra.mxu0 %v2449_v49  ;;  %1910 = vmatpush3.msra.mxu1 %v2331_v27  ;;  %v2653_v27 = vsub.f32 %v787_v5, %v2639_v10 }
  0x86   :  { %1884 = vmatprep.subr.mxu0 %v2461_v56  ;;  %1911 = vmatprep.subr.mxu1 %v2350_v34  ;;  %v915_v1 = vsub.f32 %v2661_v33, %v2685_v52 }
  0x87   :  { %1885 = vmatpush3.msra.mxu0 %v2461_v56  ;;  %1912 = vmatpush3.msra.mxu1 %v2350_v34  ;;  %v2664_v34 = vsub.f32 %v785_v16, %v2644_v20  ;;  %v779_v56 = vld [vmem:[#allocation7 + $0x30] sm:$0xff]  ;;  %v2770_v16 = vand.u32 4294901760, %v776_v14 }
  0x88   :  { %1886 = vmatprep.subr.mxu0 %v2477_v12  ;;  %1913 = vmatprep.subr.mxu1 %v2368_v45  ;;  %v916_v30 = vand.u32 4294901760, %v915_v1  ;;  %v2735_v7 = vand.u32 4294901760, %v779_v56 }
  0x89   :  { %1887 = vmatpush3.msra.mxu0 %v2477_v12  ;;  %1914 = vmatpush3.msra.mxu1 %v2368_v45  ;;  %v2675_v45 = vand.u32 4294901760, %v2653_v27  ;;  %v2688_v53 = vand.u32 4294901760, %v2664_v34  ;;  %v778_v12 = vld [vmem:[#allocation7 + $0x28] sm:$0xff] }
  0x8a   :  { %1888 = vmatprep.subr.mxu0 %v2484_v36  ;;  %1915 = vmatprep.subr.mxu1 %v2374_v47  ;;  %v2745_v41 = vand.u32 4294901760, %v778_v12 }
  0x8b   :  { %1889 = vmatpush3.msra.mxu0 %v2484_v36  ;;  %1890 = vmatprep.mubr.f32.mxu0 %v2397_v61  ;;  %v908_v60 = vsub.f32 %v2653_v27, %v2675_v45  ;;  %v922_v6 = vsub.f32 %v2664_v34, %v2688_v53  ;;  %v2743_v36 = vsub.f32 %v779_v56, %v2735_v7 }
  0x8c   :  { %1916 = vmatpush3.msra.mxu1 %v2374_v47  ;;  %1891 = vmatmul.mubr.f32.vlgmr.msra.gmra.mxu0 %v2400_v62  ;;  %v2682_v47 = vsub.f32 %v782_v23, %v2658_v29  ;;  %v2755_v63 = vsub.f32 %v778_v12, %v2745_v41 }
  0x8d   :  { %1917 = vmatprep.subr.mxu1 %v2389_v57  ;;  %1925 = vmatprep.mubr.f32.mxu1 %v2397_v61  ;;  %v2697_v61 = vand.u32 4294901760, %v2678_v46  ;;  %v2752_v54 = vand.u32 4294901760, %v2743_v36 }
  0x8e   :  { %1918 = vmatpush3.msra.mxu1 %v2389_v57  ;;  %1928 = vmatprep.subr.mxu0 %v2634_v4  ;;  %v2691_v57 = vand.u32 4294901760, %v2667_v39  ;;  %v2711_v25 = vand.u32 4294901760, %v2682_v47  ;;  %v2764_v5 = vand.u32 4294901760, %v2755_v63 }
  0x8f   :  { %1919 = vmatprep.subr.mxu1 %v2412_v8  ;;  %1929 = vmatpush3.msra.mxu0 %v2634_v4  ;;  %v936_v32 = vsub.f32 %v2678_v46, %v2697_v61  ;;  %3020 = vst [vmem:[#allocation15_spill] sm:$0xff] %v2752_v54  ;;  %v964_v3 = vsub.f32 %v2743_v36, %v2752_v54 }
  0x90   :  { %1920 = vmatpush3.msra.mxu1 %v2412_v8  ;;  %1930 = vmatprep.subr.mxu0 %v2639_v10  ;;  %v909_v8 = vand.u32 4294901760, %v908_v60  ;;  %v929_v13 = vsub.f32 %v2667_v39, %v2691_v57  ;;  %3017 = vst [vmem:[#allocation12_spill] sm:$0xff] %v2711_v25  ;;  %v943_v40 = vsub.f32 %v2682_v47, %v2711_v25  ;;  %3021 = vst [vmem:[#allocation16_spill] sm:$0xff] %v2764_v5  ;;  %v774_v60 = vld [vmem:[#allocation7 + $0x8] sm:$0xff] }
  0x91   :  { %1921 = vmatprep.subr.mxu1 %v2427_v31  ;;  %1931 = vmatpush3.msra.mxu0 %v2639_v10  ;;  %v937_v49 = vand.u32 4294901760, %v936_v32  ;;  %v965_v22 = vand.u32 4294901760, %v964_v3  ;;  %v971_v23 = vsub.f32 %v2755_v63, %v2764_v5 }
  0x92   :  { %1922 = vmatpush3.msra.mxu1 %v2427_v31  ;;  %1932 = vmatprep.subr.mxu0 %v2642_v19  ;;  %v923_v31 = vand.u32 4294901760, %v922_v6  ;;  %v944_v59 = vand.u32 4294901760, %v943_v40 }
  0x93   :  { %1923 = vmatprep.subr.mxu1 %v2439_v38  ;;  %1933 = vmatpush3.msra.mxu0 %v2642_v19  ;;  %v972_v1 = vand.u32 4294901760, %v971_v23 }
  0x94   :  { %1924 = vmatpush3.msra.mxu1 %v2439_v38  ;;  %1934 = vmatprep.subr.mxu0 %v2644_v20  ;;  %v930_v38 = vand.u32 4294901760, %v929_v13  ;;  %v2789_v13 = vand.u32 4294901760, %v774_v60 }
  0x95   :  { %1926 = vmatmul.mubr.f32.vlgmr.msra.gmra.mxu1 %v2400_v62  ;;  %v2701_v62 = vsub.f32 %v781_v24, %v2670_v42  ;;  %1935 = vmatpush3.msra.mxu0 %v2644_v20  ;;  %v2776_v24 = vand.u32 4294901760, %v2767_v11 }
  0x96   :  { %1963 = vmatprep.subr.mxu1 %v902_v58  ;;  %1936 = vmatprep.subr.mxu0 %v2646_v21  ;;  %v2800_v40 = vsub.f32 %v774_v60, %v2789_v13 }
  0x97   :  { %1964 = vmatpush3.msra.mxu1 %v902_v58  ;;  %1937 = vmatpush3.msra.mxu0 %v2646_v21  ;;  %v2718_v37 = vand.u32 4294901760, %v2701_v62  ;;  %3022 = vst [vmem:[#allocation17_spill] sm:$0xff] %v2776_v24  ;;  %v2781_v58 = vsub.f32 %v776_v14, %v2770_v16  ;;  %v978_v6 = vsub.f32 %v2767_v11, %v2776_v24 }
  0x98   :  { %1965 = vmatprep.subr.mxu1 %v909_v8  ;;  %1938 = vmatprep.subr.mxu0 %v2656_v28  ;;  %v2811_v56 = vand.u32 4294901760, %v2800_v40 }
  0x99   :  { %3018 = vst [vmem:[#allocation13_spill] sm:$0xff] %v2718_v37  ;;  %1966 = vmatpush3.msra.mxu1 %v909_v8  ;;  %1939 = vmatpush3.msra.mxu0 %v2656_v28  ;;  %v950_v50 = vsub.f32 %v2701_v62, %v2718_v37  ;;  %v2787_v8 = vsub.f32 %v775_v17, %v2778_v43  ;;  %v979_v32 = vand.u32 4294901760, %v978_v6 }
  0x9a   :  { %1967 = vmatprep.subr.mxu1 %v916_v30  ;;  %1940 = vmatprep.subr.mxu0 %v2658_v29  ;;  %3025 = vst [vmem:[#allocation20_spill] sm:$0xff] %v2811_v56  ;;  %v999_v44 = vsub.f32 %v2800_v40, %v2811_v56 }
  0x9b   :  { %1968 = vmatpush3.msra.mxu1 %v916_v30  ;;  %1941 = vmatpush3.msra.mxu0 %v2658_v29  ;;  %v951_v18 = vand.u32 4294901760, %v950_v50  ;;  %v2793_v30 = vand.u32 4294901760, %v2781_v58 }
  0x9c   :  { %1969 = vmatprep.subr.mxu1 %v923_v31  ;;  %1942 = vmatprep.subr.mxu0 %v2670_v42  ;;  %v1000_v14 = vand.u32 4294901760, %v999_v44 }
  0x9d   :  { %1970 = vmatpush3.msra.mxu1 %v923_v31  ;;  %1943 = vmatpush3.msra.mxu0 %v2670_v42  ;;  %3023 = vst [vmem:[#allocation18_spill] sm:$0xff] %v2793_v30  ;;  %v773_v31 = vld [vmem:[#allocation7] sm:$0xff] }
  0x9e   :  { %1971 = vmatprep.subr.mxu1 %v930_v38  ;;  %1944 = vmatprep.subr.mxu0 %v2728_v51  ;;  %v2802_v48 = vand.u32 4294901760, %v773_v31 }
  0x9f   :  { %1972 = vmatpush3.msra.mxu1 %v930_v38  ;;  %1945 = vmatpush3.msra.mxu0 %v2728_v51  ;;  %v2797_v38 = vand.u32 4294901760, %v2787_v8 }
  0xa0   :  { %1973 = vmatprep.subr.mxu1 %v937_v49  ;;  %1946 = vmatprep.subr.mxu0 %v2735_v7 }
  0xa1   :  { %1974 = vmatpush3.msra.mxu1 %v937_v49  ;;  %1947 = vmatpush3.msra.mxu0 %v2735_v7  ;;  %3024 = vst [vmem:[#allocation19_spill] sm:$0xff] %v2797_v38  ;;  %v985_v49 = vsub.f32 %v2781_v58, %v2793_v30  ;;  %v992_v50 = vsub.f32 %v2787_v8, %v2797_v38 }
  0xa2   :  { %1975 = vmatprep.subr.mxu1 %v944_v59  ;;  %1948 = vmatprep.subr.mxu0 %v2745_v41 }
  0xa3   :  { %1976 = vmatpush3.msra.mxu1 %v944_v59  ;;  %1949 = vmatpush3.msra.mxu0 %v2745_v41  ;;  %v2814_v59 = vsub.f32 %v773_v31, %v2802_v48  ;;  %v986_v12 = vand.u32 4294901760, %v985_v49 }
  0xa4   :  { %1977 = vmatprep.subr.mxu1 %v951_v18  ;;  %1950 = vmatprep.subr.mxu0 %v2757_v0 }
  0xa5   :  { %1978 = vmatpush3.msra.mxu1 %v951_v18  ;;  %1951 = vmatpush3.msra.mxu0 %v2757_v0  ;;  %v993_v18 = vand.u32 4294901760, %v992_v50  ;;  %v2821_v55 = vand.u32 4294901760, %v2814_v59 }
  0xa6   :  { %1979 = vmatprep.subr.mxu1 %v958_v15  ;;  %1952 = vmatprep.subr.mxu0 %v2770_v16 }
  0xa7   :  { %1980 = vmatpush3.msra.mxu1 %v958_v15  ;;  %1953 = vmatpush3.msra.mxu0 %v2770_v16  ;;  %3026 = vst [vmem:[#allocation21_spill] sm:$0xff] %v2821_v55  ;;  %v1006_v15 = vsub.f32 %v2814_v59, %v2821_v55 }
  0xa8   :  { %1981 = vmatprep.subr.mxu1 %v965_v22  ;;  %1954 = vmatprep.subr.mxu0 %v2778_v43 }
  0xa9   :  { %1982 = vmatpush3.msra.mxu1 %v965_v22  ;;  %1955 = vmatpush3.msra.mxu0 %v2778_v43  ;;  %v1007_v3 = vand.u32 4294901760, %v1006_v15  ;;  %v1500_v22 = vld [vmem:[%s2989_s2] ss:$0 sm:$0xff] }
  0xaa   :  { %1983 = vmatprep.subr.mxu1 %v972_v1  ;;  %1956 = vmatprep.subr.mxu0 %v2789_v13 }
  0xab   :  { %1984 = vmatpush3.msra.mxu1 %v972_v1  ;;  %1957 = vmatpush3.msra.mxu0 %v2789_v13 }
  0xac   :  { %1985 = vmatprep.subr.mxu1 %v979_v32  ;;  %1958 = vmatprep.subr.mxu0 %v2802_v48 }
  0xad   :  { %1986 = vmatpush3.msra.mxu1 %v979_v32  ;;  %1959 = vmatpush3.msra.mxu0 %v2802_v48 }
  0xae   :  { %1987 = vmatprep.subr.mxu1 %v986_v12  ;;  %1998 = vmatprep.subr.mxu0 %v2637_v9 }
  0xaf   :  { %1988 = vmatpush3.msra.mxu1 %v986_v12 }
  0xb0   :  { %1989 = vmatprep.subr.mxu1 %v993_v18 }
  0xb1   :  { %1990 = vmatpush3.msra.mxu1 %v993_v18 }
  0xb2   :  { %1991 = vmatprep.subr.mxu1 %v1000_v14 }
  0xb3   :  { %1992 = vmatpush3.msra.mxu1 %v1000_v14 }
  0xb4   :  { %1993 = vmatprep.subr.mxu1 %v1007_v3 }
  0xb5   :  { %1994 = vmatpush3.msra.mxu1 %v1007_v3 }
  0xb6   :  { %2033 = vmatprep.subr.mxu1 %v2634_v4 }
 0x109   :  { %v1752_v17 = vpop.f32.mrf.mxu0 }
 0x10a   :  { %v185_v6 = vadd.f32 %v1752_v17, %v1500_v22 }
 0x10b   :  { %v174_v23 = vpop.f32.mrf.mxu0 }
 0x10c   :  { %v175_v32 = vadd.f32 %v1500_v22, %v174_v23 }
 0x111   :  { %v1787_v60 = vpop.f32.mrf.mxu1 }
 0x112   :  { %v342_v12 = vadd.f32 %v1787_v60, %v185_v6 }
 0x113   :  { %v335_v31 = vpop.f32.mrf.mxu1 }
 0x114   :  { %v336_v44 = vadd.f32 %v335_v31, %v175_v32 }
 0x12a   :  { %v1822_v1 = vpop.f32.mrf.mxu0 }
 0x12b   :  { %v453_v14 = vadd.f32 %v1822_v1, %v342_v12 }
 0x12c   :  { %v445_v49 = vpop.f32.mrf.mxu0 }
 0x12d   :  { %v446_v3 = vadd.f32 %v445_v49, %v336_v44 }
 0x133   :  { %v1857_v50 = vpop.f32.mrf.mxu1 }
 0x134   :  { %v550_v55 = vadd.f32 %v1857_v50, %v453_v14 }
 0x135   :  { %v541_v15 = vpop.f32.mrf.mxu1 }
 0x136   :  { %v542_v38 = vadd.f32 %v541_v15, %v446_v3 }
 0x14c   :  { %v1892_v18 = vpop.f32.mrf.mxu0 }
 0x14d   :  { %v675_v30 = vadd.f32 %v1892_v18, %v550_v55 }
 0x14e   :  { %v668_v56 = vpop.f32.mrf.mxu0 }
 0x14f   :  { %v669_v5 = vadd.f32 %v668_v56, %v542_v38 }
 0x155   :  { %v1927_v24 = vpop.f32.mrf.mxu1 }
 0x156   :  { %v768_v54 = vadd.f32 %v1927_v24, %v675_v30 }
 0x157   :  { %v761_v35 = vpop.f32.mrf.mxu1 }
 0x158   :  { %v772_v37 = vmax.f32 %v768_v54, 0.0  ;;  %v762_v17 = vadd.f32 %v761_v35, %v669_v5 }
 0x15a   :  { %v2831_v25 = vand.u32 4294901760, %v772_v37  ;;  %v771_v22 = vmax.f32 %v762_v17, 0.0 }
 0x15c   :  { %v2834_v23 = vsub.f32 %v772_v37, %v2831_v25  ;;  %v2836_v60 = vand.u32 4294901760, %v771_v22 }
 0x15e   :  { %v889_v1 = vand.u32 4294901760, %v2834_v23  ;;  %v878_v6 = vsub.f32 %v771_v22, %v2836_v60  ;;  %1995 = vmatprep.mubr.f32.mxu1 %v2836_v60 }
 0x15f   :  { %1996 = vmatmul.mubr.f32.vlgmr.msra.gmra.mxu1 %v2831_v25 }
 0x160   :  { %2034 = vmatpush3.msra.mxu1 %v2634_v4  ;;  %v879_v54 = vand.u32 4294901760, %v878_v6  ;;  %v890_v35 = vsub.f32 %v2834_v23, %v889_v1 }
 0x161   :  { %2035 = vmatprep.subr.mxu1 %v2639_v10 }
 0x162   :  { %2036 = vmatpush3.msra.mxu1 %v2639_v10  ;;  %2065 = vmatprep.mubr.f32.mxu1 %v879_v54  ;;  %v880_v37 = vsub.f32 %v878_v6, %v879_v54  ;;  %v891_v24 = vand.u32 4294901760, %v890_v35 }
 0x163   :  { %2037 = vmatprep.subr.mxu1 %v2642_v19 }
 0x164   :  { %2038 = vmatpush3.msra.mxu1 %v2642_v19  ;;  %v881_v5 = vand.u32 4294901760, %v880_v37 }
 0x165   :  { %2039 = vmatprep.subr.mxu1 %v2644_v20 }
 0x166   :  { %2040 = vmatpush3.msra.mxu1 %v2644_v20  ;;  %1960 = vmatprep.mubr.f32.mxu0 %v881_v5 }
 0x167   :  { %2041 = vmatprep.subr.mxu1 %v2646_v21  ;;  %1961 = vmatmul.mubr.f32.vlgmr.msra.gmra.mxu0 %v891_v24 }
 0x168   :  { %1999 = vmatpush3.msra.mxu0 %v2637_v9  ;;  %2042 = vmatpush3.msra.mxu1 %v2646_v21  ;;  %v3028_v9 = vld [vmem:[#allocation13_spill] sm:$0xff] }
 0x169   :  { %2000 = vmatprep.subr.mxu0 %v2653_v27  ;;  %2030 = vmatprep.mubr.f32.mxu0 %v878_v6 }
 0x16a   :  { %2043 = vmatprep.subr.mxu1 %v2656_v28  ;;  %2001 = vmatpush3.msra.mxu0 %v2653_v27  ;;  %v3034_v27 = vld [vmem:[#allocation19_spill] sm:$0xff] }
 0x16b   :  { %2044 = vmatpush3.msra.mxu1 %v2656_v28  ;;  %2002 = vmatprep.subr.mxu0 %v2661_v33 }
 0x16c   :  { %2045 = vmatprep.subr.mxu1 %v2658_v29  ;;  %2003 = vmatpush3.msra.mxu0 %v2661_v33 }
 0x16d   :  { %2046 = vmatpush3.msra.mxu1 %v2658_v29  ;;  %2004 = vmatprep.subr.mxu0 %v2664_v34 }
 0x16e   :  { %2047 = vmatprep.subr.mxu1 %v2670_v42  ;;  %2005 = vmatpush3.msra.mxu0 %v2664_v34  ;;  %v1501_v34 = vld [vmem:[%s2991_s4] ss:$0 sm:$0xff]  ;;  %s2235_s4 = smov [#allocation8]  }
 0x16f   :  { %2048 = vmatpush3.msra.mxu1 %v2670_v42  ;;  %2006 = vmatprep.subr.mxu0 %v2667_v39  ;;  %s1487_s10 = sshll.u32 %s2235_s4, 4  ;;  %s1488_s10 = int_to_ptr.vmem [resolvable:$true] %s1487_s10 }
 0x170   :  { %2049 = vmatprep.subr.mxu1 %v2728_v51  ;;  %2007 = vmatpush3.msra.mxu0 %v2667_v39  ;;  %s2204_s11 = scalar_lea.vmem %s1488_s10, 256  ;;  %p2209_p2 = scmp.lt.s32.totalorder %s1488_s10, %s1488_s10 }
 0x171   :  { %2050 = vmatpush3.msra.mxu1 %v2728_v51  ;;  %2008 = vmatprep.subr.mxu0 %v2678_v46  ;;  %p2205_p1 = scmp.ne.s32.totalorder %s1488_s10, %s2204_s11  ;;  %p2210_p3 = scmp.lt.s32.totalorder %s2204_s11, %s2204_s11 }
 0x172   :  { %2051 = vmatprep.subr.mxu1 %v2735_v7  ;;  %2009 = vmatpush3.msra.mxu0 %v2678_v46 }
 0x173   :  { %2052 = vmatpush3.msra.mxu1 %v2735_v7  ;;  %2010 = vmatprep.subr.mxu0 %v2682_v47  ;;  %p2211_p4 = por %p2210_p3, %p2209_p2 }
 0x174   :  { %2053 = vmatprep.subr.mxu1 %v2745_v41  ;;  %2011 = vmatpush3.msra.mxu0 %v2682_v47 }
 0x175   :  { %2054 = vmatpush3.msra.mxu1 %v2745_v41  ;;  %2012 = vmatprep.subr.mxu0 %v2701_v62  ;;  %p2212_p5 = pnand %p2211_p4, %p2205_p1 }
 0x176   :  { %2055 = vmatprep.subr.mxu1 %v2757_v0  ;;  %2013 = vmatpush3.msra.mxu0 %v2701_v62 }
 0x177   :  { %2056 = vmatpush3.msra.mxu1 %v2757_v0  ;;  %2014 = vmatprep.subr.mxu0 %v2733_v2 }
 0x178   :  { %2057 = vmatprep.subr.mxu1 %v2770_v16  ;;  %2015 = vmatpush3.msra.mxu0 %v2733_v2 }
 0x179   :  { %2058 = vmatpush3.msra.mxu1 %v2770_v16  ;;  %2016 = vmatprep.subr.mxu0 %v2743_v36 }
 0x17a   :  { %2059 = vmatprep.subr.mxu1 %v2778_v43  ;;  %2017 = vmatpush3.msra.mxu0 %v2743_v36 }
 0x17b   :  { %2060 = vmatpush3.msra.mxu1 %v2778_v43  ;;  %2018 = vmatprep.subr.mxu0 %v2755_v63 }
 0x17c   :  { %2061 = vmatprep.subr.mxu1 %v2789_v13  ;;  %2019 = vmatpush3.msra.mxu0 %v2755_v63 }
 0x17d   :  { %2062 = vmatpush3.msra.mxu1 %v2789_v13  ;;  %2020 = vmatprep.subr.mxu0 %v2767_v11 }
 0x17e   :  { %2063 = vmatprep.subr.mxu1 %v2802_v48  ;;  %2021 = vmatpush3.msra.mxu0 %v2767_v11 }
 0x17f   :  { %2064 = vmatpush3.msra.mxu1 %v2802_v48  ;;  %2022 = vmatprep.subr.mxu0 %v2781_v58 }
 0x180   :  { %2066 = vmatmul.mubr.f32.vlgmr.msra.gmra.mxu1 %v889_v1  ;;  %2103 = vmatprep.subr.mxu1 %v2634_v4 }
 0x181   :  { %2023 = vmatpush3.msra.mxu0 %v2781_v58  ;;  %2104 = vmatpush3.msra.mxu1 %v2634_v4  ;;  %v3027_v4 = vld [vmem:[#allocation12_spill] sm:$0xff] }
 0x182   :  { %2135 = vmatprep.mubr.f32.mxu1 %v2836_v60  ;;  %2024 = vmatprep.subr.mxu0 %v2787_v8 }
 0x183   :  { %2105 = vmatprep.subr.mxu1 %v2639_v10  ;;  %2025 = vmatpush3.msra.mxu0 %v2787_v8 }
 0x184   :  { %2106 = vmatpush3.msra.mxu1 %v2639_v10  ;;  %2026 = vmatprep.subr.mxu0 %v2800_v40  ;;  %v3029_v10 = vld [vmem:[#allocation14_spill] sm:$0xff] }
 0x185   :  { %2107 = vmatprep.subr.mxu1 %v2642_v19  ;;  %2027 = vmatpush3.msra.mxu0 %v2800_v40 }
 0x186   :  { %2108 = vmatpush3.msra.mxu1 %v2642_v19  ;;  %2028 = vmatprep.subr.mxu0 %v2814_v59  ;;  %v3030_v19 = vld [vmem:[#allocation15_spill] sm:$0xff] }
 0x187   :  { %2109 = vmatprep.subr.mxu1 %v2644_v20  ;;  %2029 = vmatpush3.msra.mxu0 %v2814_v59 }
 0x188   :  { %2110 = vmatpush3.msra.mxu1 %v2644_v20  ;;  %2031 = vmatmul.mubr.f32.vlgmr.msra.gmra.mxu0 %v2834_v23  ;;  %v3031_v20 = vld [vmem:[#allocation16_spill] sm:$0xff] }
 0x189   :  { %2068 = vmatprep.subr.mxu0 %v2650_v26  ;;  %2111 = vmatprep.subr.mxu1 %v2646_v21 }
 0x18a   :  { %2069 = vmatpush3.msra.mxu0 %v2650_v26  ;;  %2100 = vmatprep.mubr.f32.mxu0 %v2836_v60  ;;  %v3033_v26 = vld [vmem:[#allocation18_spill] sm:$0xff] }
 0x18b   :  { %2112 = vmatpush3.msra.mxu1 %v2646_v21  ;;  %2070 = vmatprep.subr.mxu0 %v2675_v45  ;;  %v3032_v21 = vld [vmem:[#allocation17_spill] sm:$0xff] }
 0x18c   :  { %2113 = vmatprep.subr.mxu1 %v2656_v28  ;;  %2071 = vmatpush3.msra.mxu0 %v2675_v45 }
 0x18d   :  { %2114 = vmatpush3.msra.mxu1 %v2656_v28  ;;  %2072 = vmatprep.subr.mxu0 %v2685_v52  ;;  %v3035_v28 = vld [vmem:[#allocation20_spill] sm:$0xff] }
 0x18e   :  { %2115 = vmatprep.subr.mxu1 %v2658_v29  ;;  %2073 = vmatpush3.msra.mxu0 %v2685_v52 }
 0x18f   :  { %2116 = vmatpush3.msra.mxu1 %v2658_v29  ;;  %2074 = vmatprep.subr.mxu0 %v2688_v53  ;;  %v3036_v29 = vld [vmem:[#allocation21_spill] sm:$0xff] }
 0x190   :  { %2117 = vmatprep.subr.mxu1 %v2670_v42  ;;  %2075 = vmatpush3.msra.mxu0 %v2688_v53 }
 0x191   :  { %2118 = vmatpush3.msra.mxu1 %v2670_v42  ;;  %2076 = vmatprep.subr.mxu0 %v2691_v57 }
 0x192   :  { %2119 = vmatprep.subr.mxu1 %v2728_v51  ;;  %2077 = vmatpush3.msra.mxu0 %v2691_v57 }
 0x193   :  { %2120 = vmatpush3.msra.mxu1 %v2728_v51  ;;  %2078 = vmatprep.subr.mxu0 %v2697_v61 }
 0x194   :  { %2121 = vmatprep.subr.mxu1 %v2735_v7  ;;  %2079 = vmatpush3.msra.mxu0 %v2697_v61 }
 0x195   :  { %2122 = vmatpush3.msra.mxu1 %v2735_v7  ;;  %2080 = vmatprep.subr.mxu0 %v3027_v4 }
 0x196   :  { %2123 = vmatprep.subr.mxu1 %v2745_v41  ;;  %2081 = vmatpush3.msra.mxu0 %v3027_v4 }
 0x197   :  { %2124 = vmatpush3.msra.mxu1 %v2745_v41  ;;  %2082 = vmatprep.subr.mxu0 %v3028_v9 }
 0x198   :  { %2125 = vmatprep.subr.mxu1 %v2757_v0  ;;  %2083 = vmatpush3.msra.mxu0 %v3028_v9 }
 0x199   :  { %2126 = vmatpush3.msra.mxu1 %v2757_v0  ;;  %2084 = vmatprep.subr.mxu0 %v3029_v10 }
 0x19a   :  { %2127 = vmatprep.subr.mxu1 %v2770_v16  ;;  %2085 = vmatpush3.msra.mxu0 %v3029_v10 }
 0x19b   :  { %2128 = vmatpush3.msra.mxu1 %v2770_v16  ;;  %2086 = vmatprep.subr.mxu0 %v3030_v19 }
 0x19c   :  { %2129 = vmatprep.subr.mxu1 %v2778_v43  ;;  %2087 = vmatpush3.msra.mxu0 %v3030_v19 }
 0x19d   :  { %2130 = vmatpush3.msra.mxu1 %v2778_v43  ;;  %2088 = vmatprep.subr.mxu0 %v3031_v20 }
 0x19e   :  { %2131 = vmatprep.subr.mxu1 %v2789_v13  ;;  %2089 = vmatpush3.msra.mxu0 %v3031_v20 }
 0x19f   :  { %2132 = vmatpush3.msra.mxu1 %v2789_v13  ;;  %2090 = vmatprep.subr.mxu0 %v3032_v21 }
 0x1a0   :  { %2133 = vmatprep.subr.mxu1 %v2802_v48  ;;  %2091 = vmatpush3.msra.mxu0 %v3032_v21 }
 0x1a1   :  { %2134 = vmatpush3.msra.mxu1 %v2802_v48  ;;  %2092 = vmatprep.subr.mxu0 %v3033_v26 }
 0x1a2   :  { %2136 = vmatmul.mubr.f32.vlgmr.msra.gmra.mxu1 %v2831_v25  ;;  %2093 = vmatpush3.msra.mxu0 %v3033_v26 }
 0x1a3   :  { %2094 = vmatprep.subr.mxu0 %v3034_v27 }
 0x1a4   :  { %2095 = vmatpush3.msra.mxu0 %v3034_v27 }
 0x1a5   :  { %2096 = vmatprep.subr.mxu0 %v3035_v28 }
 0x1a6   :  { %2097 = vmatpush3.msra.mxu0 %v3035_v28 }
 0x1a7   :  { %2098 = vmatprep.subr.mxu0 %v3036_v29 }
 0x1a8   :  { %2099 = vmatpush3.msra.mxu0 %v3036_v29 }
 0x1a9   :  { %2101 = vmatmul.mubr.f32.vlgmr.msra.gmra.mxu0 %v2831_v25 }
 0x21f   :  { %v1997_v39 = vpop.f32.mrf.mxu1 }
 0x221   :  { %v1044_v52 = vpop.f32.mrf.mxu1 }
 0x227   :  { %v1962_v33 = vpop.f32.mrf.mxu0 }
 0x228   :  { %v894_v45 = vadd.f32 %v1962_v33, %v1501_v34 }
 0x229   :  { %v883_v42 = vpop.f32.mrf.mxu0 }
 0x22a   :  { %v884_v47 = vadd.f32 %v1501_v34, %v883_v42  ;;  %v1051_v53 = vadd.f32 %v1997_v39, %v894_v45 }
 0x22c   :  { %v1045_v51 = vadd.f32 %v1044_v52, %v884_v47 }
 0x240   :  { %v2067_v57 = vpop.f32.mrf.mxu1 }
 0x242   :  { %v1250_v7 = vpop.f32.mrf.mxu1 }
 0x248   :  { %v2032_v46 = vpop.f32.mrf.mxu0 }
 0x249   :  { %v1162_v62 = vadd.f32 %v2032_v46, %v1051_v53 }
 0x24a   :  { %v1154_v61 = vpop.f32.mrf.mxu0 }
 0x24b   :  { %v1155_v2 = vadd.f32 %v1154_v61, %v1045_v51  ;;  %v1259_v36 = vadd.f32 %v2067_v57, %v1162_v62 }
 0x24d   :  { %v1251_v0 = vadd.f32 %v1250_v7, %v1155_v2 }
 0x262   :  { %v2137_v25 = vpop.f32.mrf.mxu1 }
 0x264   :  { %v1470_v58 = vpop.f32.mrf.mxu1 }
 0x269   :  { %v2102_v41 = vpop.f32.mrf.mxu0 }
 0x26a   :  { %v1384_v63 = vadd.f32 %v2102_v41, %v1259_v36 }
 0x26b   :  { %v1377_v11 = vpop.f32.mrf.mxu0 }
 0x26c   :  { %v1477_v16 = vadd.f32 %v2137_v25, %v1384_v63  ;;  %v1378_v43 = vadd.f32 %v1377_v11, %v1251_v0 }
 0x26e   :  { %1481 = vst [vmem:[#allocation8 + $0x8] sm:$0xff] %v1477_v16  ;;  %v1471_v8 = vadd.f32 %v1470_v58, %v1378_v43 }
 0x270   :  { %1480 = vst [vmem:[#allocation8] sm:$0xff] %v1471_v8 }
 0x271   :  { %2215 = shalt.err (!%p2212_p5)
}
 0x272   :  { %1493 = dma.vmem_to_hbm [thread:$0]  %s1488_s10, 256, %s2992_s5, [#allocation4], %s2232_s23, %s2232_s23, %s2233_s24  }
 0x273   :  { %2228 = dma.done.wait [#allocation4], 256  }
 0x274   :  { %2229 = vsyncadd [#allocation4], 4294967040 }
 0x275   :  { %1497 = vsyncpa [#allocation3], 1 }
 0x276   :  { %1498 = vsyncpa [#allocation6], 1 }
 0x277   :  { %1499 = vsyncpa [#allocation4], 1 }

// kernel: tpu_custom_call.1
= control target key start
LH: loop header
LB: loop body
LE: loop exit
PB: predicated region body
PF: predicated region fallthrough
CT: control target
= control target key end

     0   :  { %10 = vsyncpa [#allocation3], 0  ;;  %s2987_s0 = inlined_call_operand.hbm [shape: f32[16,128], index: 0, kind: input, shape index: {}]   ;;  %s2988_s1 = inlined_call_operand.hbm [shape: f32[128,128], index: 1, kind: input, shape index: {}]   ;;  %s2989_s2 = inlined_call_operand.vmem [shape: f32[1,128], index: 2, kind: input, shape index: {}]   ;;  %s2990_s3 = inlined_call_operand.hbm [shape: f32[128,128], index: 3, kind: input, shape index: {}]   ;;  %s2991_s4 = inlined_call_operand.vmem [shape: f32[1,128], index: 4, kind: input, shape index: {}]   ;;  %s2992_s5 = inlined_call_operand.hbm [shape: f32[16,128], index: 5, kind: output, shape index: {}]  }
   0x1   :  { %11 = vsyncpa [#allocation6], 0 }
   0x2   :  { %12 = vsyncpa [#allocation4], 0  ;;  %s2230_s18 = smov [#allocation5]   ;;  %s2231_s20 = smov [#allocation2]  }
   0x3   :  { %s30_s19 = sshll.u32 %s2230_s18, 4  ;;  %s18_s21 = sshll.u32 %s2231_s20, 4  ;;  %s31_s19 = int_to_ptr.vmem [resolvable:$true] %s30_s19  ;;  %s19_s21 = int_to_ptr.vmem [resolvable:$true] %s18_s21 }
   0x4   :  { %s2152_s22 = scalar_lea.vmem %s31_s19, 2048  ;;  %p2157_p1 = scmp.lt.s32.totalorder %s31_s19, %s31_s19 }
   0x5   :  { %p2153_p0 = scmp.ne.s32.totalorder %s31_s19, %s2152_s22  ;;  %p2158_p2 = scmp.lt.s32.totalorder %s2152_s22, %s2152_s22 }
   0x7   :  { %p2159_p3 = por %p2158_p2, %p2157_p1 }
   0x9   :  { %p2160_p4 = pnand %p2159_p3, %p2153_p0 }
   0xb   :  { %2163 = shalt.err (!%p2160_p4)
}
   0xc   :  { %s2232_s23 = smov 128   ;;  %s2233_s24 = smov 8  }
   0xd   :  { %36 = dma.hbm_to_vmem [thread:$0]  %s2988_s1, 2048, %s31_s19, [#allocation6], %s2232_s23, %s2232_s23, %s2233_s24  }
   0xe   :  { %s2172_s27 = scalar_lea.vmem %s19_s21, 256  ;;  %p2177_p6 = scmp.lt.s32.totalorder %s19_s21, %s19_s21 }
   0xf   :  { %p2173_p5 = scmp.ne.s32.totalorder %s19_s21, %s2172_s27  ;;  %p2178_p7 = scmp.lt.s32.totalorder %s2172_s27, %s2172_s27 }
  0x11   :  { %p2179_p8 = por %p2178_p7, %p2177_p6 }
  0x13   :  { %p2180_p9 = pnand %p2179_p8, %p2173_p5 }
  0x15   :  { %2183 = shalt.err (!%p2180_p9)
}
  0x16   :  { %24 = dma.hbm_to_vmem [thread:$0]  %s2987_s0, 256, %s19_s21, [#allocation3], %s2232_s23, %s2232_s23, %s2233_s24  }
  0x17   :  { %s2234_s30 = smov [#allocation7]  }
  0x18   :  { %s44_s6 = sshll.u32 %s2234_s30, 4  ;;  %s45_s6 = int_to_ptr.vmem [resolvable:$true] %s44_s6 }
  0x19   :  { %s2192_s7 = scalar_lea.vmem %s45_s6, 2048  ;;  %p2197_p11 = scmp.lt.s32.totalorder %s45_s6, %s45_s6 }
  0x1a   :  { %p2193_p10 = scmp.ne.s32.totalorder %s45_s6, %s2192_s7  ;;  %p2198_p12 = scmp.lt.s32.totalorder %s2192_s7, %s2192_s7 }
  0x1c   :  { %p2199_p13 = por %p2198_p12, %p2197_p11 }
  0x1e   :  { %p2200_p0 = pnand %p2199_p13, %p2193_p10 }
  0x20   :  { %2203 = shalt.err (!%p2200_p0)
}
  0x21   :  { %50 = dma.hbm_to_vmem [thread:$0]  %s2990_s3, 2048, %s45_s6, [#allocation6], %s2232_s23, %s2232_s23, %s2233_s24  }
  0x22   :  { %2224 = dma.done.wait [#allocation3], 256  }
  0x23   :  { %2225 = vsyncadd [#allocation3], 4294967040 }
  0x24   :  { %2226 = dma.done.wait [#allocation6], 4096  }
  0x25   :  { %2227 = vsyncadd [#allocation6], 4294963200  ;;  %v79_v0 = vld [vmem:[#allocation5 + $0x78] sm:$0xff]  ;;  %v78_v1 = vld [vmem:[#allocation5 + $0x70] sm:$0xff] }
  0x26   :  { %v77_v2 = vld [vmem:[#allocation5 + $0x68] sm:$0xff]  ;;  %v2284_v3 = vand.u32 4294901760, %v79_v0  ;;  %v2286_v4 = vand.u32 4294901760, %v78_v1  ;;  %v76_v6 = vld [vmem:[#allocation5 + $0x60] sm:$0xff]  ;;  %v75_v7 = vld [vmem:[#allocation5 + $0x58] sm:$0xff] }
  0x27   :  { %v2288_v5 = vand.u32 4294901760, %v77_v2  ;;  %v74_v8 = vld [vmem:[#allocation5 + $0x50] sm:$0xff]  ;;  %v2290_v9 = vand.u32 4294901760, %v76_v6  ;;  %v2292_v10 = vand.u32 4294901760, %v75_v7  ;;  %v73_v12 = vld [vmem:[#allocation5 + $0x48] sm:$0xff]  ;;  %v72_v13 = vld [vmem:[#allocation5 + $0x40] sm:$0xff] }
  0x28   :  { %v2294_v11 = vand.u32 4294901760, %v74_v8  ;;  %1718 = vmatprep.subr.mxu0 %v2284_v3  ;;  %v2298_v14 = vsub.f32 %v79_v0, %v2284_v3  ;;  %v2301_v15 = vsub.f32 %v78_v1, %v2286_v4  ;;  %v2303_v16 = vand.u32 4294901760, %v73_v12  ;;  %v71_v18 = vld [vmem:[#allocation5 + $0x38] sm:$0xff]  ;;  %v70_v25 = vld [vmem:[#allocation5 + $0x30] sm:$0xff]  ;;  %v69_v35 = vld [vmem:[#allocation5 + $0x28] sm:$0xff] }
  0x29   :  { %v2306_v17 = vsub.f32 %v77_v2, %v2288_v5  ;;  %1719 = vmatpush3.msra.mxu0 %v2284_v3  ;;  %v2310_v19 = vsub.f32 %v76_v6, %v2290_v9  ;;  %v2313_v20 = vsub.f32 %v75_v7, %v2292_v10  ;;  %v2325_v24 = vand.u32 4294901760, %v72_v13  ;;  %v68_v40 = vld [vmem:[#allocation5 + $0x20] sm:$0xff]  ;;  %v67_v48 = vld [vmem:[#allocation5 + $0x18] sm:$0xff]  ;;  %v62_v49 = vld [vmem:[#allocation2] sm:$0xff] }
  0x2a   :  { %1720 = vmatprep.subr.mxu0 %v2286_v4  ;;  %v2317_v21 = vand.u32 4294901760, %v2298_v14  ;;  %v2320_v22 = vand.u32 4294901760, %v2301_v15  ;;  %v2331_v27 = vand.u32 4294901760, %v71_v18  ;;  %v2337_v29 = vsub.f32 %v74_v8, %v2294_v11  ;;  %v63_v54 = vld [vmem:[#allocation2 + $0x8] sm:$0xff]  ;;  %v66_v59 = vld [vmem:[#allocation5 + $0x10] sm:$0xff]  ;;  %v65_v2 = vld [vmem:[#allocation5 + $0x8] sm:$0xff] }
  0x2b   :  { %v2323_v23 = vand.u32 4294901760, %v2306_v17  ;;  %1721 = vmatpush3.msra.mxu0 %v2286_v4  ;;  %v2329_v26 = vand.u32 4294901760, %v2310_v19  ;;  %v2334_v28 = vand.u32 4294901760, %v2313_v20  ;;  %v2347_v33 = vsub.f32 %v73_v12, %v2303_v16 }
  0x2c   :  { %1722 = vmatprep.subr.mxu0 %v2288_v5  ;;  %v192_v30 = vsub.f32 %v2298_v14, %v2317_v21  ;;  %v199_v31 = vsub.f32 %v2301_v15, %v2320_v22  ;;  %v2350_v34 = vand.u32 4294901760, %v70_v25  ;;  %v2356_v39 = vand.u32 4294901760, %v2337_v29 }
  0x2d   :  { %v206_v32 = vsub.f32 %v2306_v17, %v2323_v23  ;;  %1723 = vmatpush3.msra.mxu0 %v2288_v5  ;;  %v213_v38 = vsub.f32 %v2310_v19, %v2329_v26  ;;  %v220_v41 = vsub.f32 %v2313_v20, %v2334_v28  ;;  %v2362_v42 = vand.u32 4294901760, %v2347_v33 }
  0x2e   :  { %1724 = vmatprep.subr.mxu0 %v2290_v9  ;;  %v193_v36 = vand.u32 4294901760, %v192_v30  ;;  %v200_v37 = vand.u32 4294901760, %v199_v31  ;;  %v2365_v43 = vsub.f32 %v72_v13, %v2325_v24  ;;  %v2368_v45 = vand.u32 4294901760, %v69_v35 }
  0x2f   :  { %1725 = vmatpush3.msra.mxu0 %v2290_v9  ;;  %v207_v44 = vand.u32 4294901760, %v206_v32  ;;  %v2371_v46 = vsub.f32 %v71_v18, %v2331_v27  ;;  %v2374_v47 = vand.u32 4294901760, %v68_v40  ;;  %v214_v50 = vand.u32 4294901760, %v213_v38  ;;  %v64_v18 = vld [vmem:[#allocation5] sm:$0xff] }
  0x30   :  { %1726 = vmatprep.subr.mxu0 %v2292_v10  ;;  %1753 = vmatprep.subr.mxu1 %v193_v36  ;;  %v227_v51 = vsub.f32 %v2337_v29, %v2356_v39  ;;  %v2380_v52 = vand.u32 4294901760, %v2365_v43  ;;  %v2383_v53 = vsub.f32 %v70_v25, %v2350_v34  ;;  %v221_v55 = vand.u32 4294901760, %v220_v41 }
  0x31   :  { %1727 = vmatpush3.msra.mxu0 %v2292_v10  ;;  %1754 = vmatpush3.msra.mxu1 %v193_v36  ;;  %v234_v56 = vsub.f32 %v2347_v33, %v2362_v42  ;;  %v2389_v57 = vand.u32 4294901760, %v67_v48  ;;  %v2392_v58 = vand.u32 4294901760, %v2371_v46  ;;  %v2395_v60 = vsub.f32 %v69_v35, %v2368_v45 }
  0x32   :  { %1728 = vmatprep.subr.mxu0 %v2294_v11  ;;  %1755 = vmatprep.subr.mxu1 %v200_v37  ;;  %v2397_v61 = vand.u32 4294901760, %v62_v49  ;;  %v2400_v62 = vand.u32 4294901760, %v63_v54  ;;  %v228_v63 = vand.u32 4294901760, %v227_v51  ;;  %v241_v0 = vsub.f32 %v2365_v43, %v2380_v52 }
  0x33   :  { %1729 = vmatpush3.msra.mxu0 %v2294_v11  ;;  %1756 = vmatpush3.msra.mxu1 %v200_v37  ;;  %v2406_v1 = vand.u32 4294901760, %v2383_v53  ;;  %v2409_v6 = vsub.f32 %v68_v40, %v2374_v47  ;;  %v235_v7 = vand.u32 4294901760, %v234_v56  ;;  %v2412_v8 = vand.u32 4294901760, %v66_v59 }
  0x34   :  { %1730 = vmatprep.subr.mxu0 %v2303_v16  ;;  %1757 = vmatprep.subr.mxu1 %v207_v44  ;;  %v248_v12 = vsub.f32 %v2371_v46, %v2392_v58  ;;  %v2418_v13 = vand.u32 4294901760, %v2395_v60  ;;  %v2421_v25 = vsub.f32 %v62_v49, %v2397_v61  ;;  %v2424_v30 = vsub.f32 %v67_v48, %v2389_v57 }
  0x35   :  { %1731 = vmatpush3.msra.mxu0 %v2303_v16  ;;  %1758 = vmatpush3.msra.mxu1 %v207_v44  ;;  %v2427_v31 = vand.u32 4294901760, %v65_v2  ;;  %v2430_v32 = vsub.f32 %v63_v54, %v2400_v62  ;;  %v242_v35 = vand.u32 4294901760, %v241_v0  ;;  %v255_v36 = vsub.f32 %v2383_v53, %v2406_v1 }
  0x36   :  { %1732 = vmatprep.subr.mxu0 %v2325_v24  ;;  %1759 = vmatprep.subr.mxu1 %v214_v50  ;;  %v2436_v37 = vand.u32 4294901760, %v2409_v6  ;;  %v2439_v38 = vand.u32 4294901760, %v64_v18  ;;  %v2442_v40 = vsub.f32 %v66_v59, %v2412_v8  ;;  %v249_v41 = vand.u32 4294901760, %v248_v12 }
  0x37   :  { %1733 = vmatpush3.msra.mxu0 %v2325_v24  ;;  %1760 = vmatpush3.msra.mxu1 %v214_v50  ;;  %v262_v44 = vsub.f32 %v2395_v60, %v2418_v13  ;;  %v2994_v48 = vand.u32 4294901760, %v2421_v25  ;;  %v2449_v49 = vand.u32 4294901760, %v2424_v30  ;;  %v2993_v50 = vand.u32 4294901760, %v2430_v32 }
  0x38   :  { %1734 = vmatprep.subr.mxu0 %v2331_v27  ;;  %1761 = vmatprep.subr.mxu1 %v221_v55  ;;  %v2454_v51 = vsub.f32 %v65_v2, %v2427_v31  ;;  %v256_v54 = vand.u32 4294901760, %v255_v36  ;;  %v2461_v56 = vand.u32 4294901760, %v2442_v40  ;;  %v2464_v59 = vsub.f32 %v64_v18, %v2439_v38 }
  0x39   :  { %1735 = vmatpush3.msra.mxu0 %v2331_v27  ;;  %1762 = vmatpush3.msra.mxu1 %v221_v55  ;;  %v269_v55 = vsub.f32 %v2409_v6, %v2436_v37  ;;  %v171_v0 = vsub.f32 %v2421_v25, %v2994_v48  ;;  %v276_v2 = vsub.f32 %v2424_v30, %v2449_v49 }
  0x3a   :  { %1736 = vmatprep.subr.mxu0 %v2350_v34  ;;  %1763 = vmatprep.subr.mxu1 %v228_v63  ;;  %v2477_v12 = vand.u32 4294901760, %v2454_v51  ;;  %v2484_v36 = vand.u32 4294901760, %v2464_v59 }
  0x3b   :  { %1737 = vmatpush3.msra.mxu0 %v2350_v34  ;;  %1764 = vmatpush3.msra.mxu1 %v228_v63  ;;  %v263_v63 = vand.u32 4294901760, %v262_v44  ;;  %v270_v18 = vand.u32 4294901760, %v269_v55  ;;  %v277_v44 = vand.u32 4294901760, %v276_v2 }
  0x3c   :  { %1738 = vmatprep.subr.mxu0 %v2368_v45  ;;  %1765 = vmatprep.subr.mxu1 %v235_v7  ;;  %v290_v55 = vsub.f32 %v2454_v51, %v2477_v12  ;;  %v297_v48 = vsub.f32 %v2464_v59, %v2484_v36 }
  0x3d   :  { %1739 = vmatpush3.msra.mxu0 %v2368_v45  ;;  %1766 = vmatpush3.msra.mxu1 %v235_v7  ;;  %v181_v7 = vsub.f32 %v2430_v32, %v2993_v50 }
  0x3e   :  { %1740 = vmatprep.subr.mxu0 %v2374_v47  ;;  %1767 = vmatprep.subr.mxu1 %v242_v35 }
  0x3f   :  { %1741 = vmatpush3.msra.mxu0 %v2374_v47  ;;  %1768 = vmatpush3.msra.mxu1 %v242_v35  ;;  %v283_v35 = vsub.f32 %v2442_v40, %v2461_v56  ;;  %v182_v50 = vand.u32 4294901760, %v181_v7 }
  0x40   :  { %1742 = vmatprep.subr.mxu0 %v2389_v57  ;;  %1769 = vmatprep.subr.mxu1 %v249_v41 }
  0x41   :  { %1743 = vmatpush3.msra.mxu0 %v2389_v57  ;;  %1770 = vmatpush3.msra.mxu1 %v249_v41  ;;  %v172_v41 = vand.u32 4294901760, %v171_v0  ;;  %v298_v0 = vand.u32 4294901760, %v297_v48  ;;  %v780_v48 = vld [vmem:[#allocation7 + $0x38] sm:$0xff] }
  0x42   :  { %1744 = vmatprep.subr.mxu0 %v2412_v8  ;;  %1771 = vmatprep.subr.mxu1 %v256_v54 }
  0x43   :  { %1745 = vmatpush3.msra.mxu0 %v2412_v8  ;;  %1772 = vmatpush3.msra.mxu1 %v256_v54  ;;  %v284_v54 = vand.u32 4294901760, %v283_v35 }
  0x44   :  { %1746 = vmatprep.subr.mxu0 %v2427_v31  ;;  %1773 = vmatprep.subr.mxu1 %v263_v63 }
  0x45   :  { %1747 = vmatpush3.msra.mxu0 %v2427_v31  ;;  %1774 = vmatpush3.msra.mxu1 %v263_v63  ;;  %v291_v63 = vand.u32 4294901760, %v290_v55 }
  0x46   :  { %1748 = vmatprep.subr.mxu0 %v2439_v38  ;;  %1775 = vmatprep.subr.mxu1 %v270_v18 }
  0x47   :  { %1749 = vmatpush3.msra.mxu0 %v2439_v38  ;;  %1776 = vmatpush3.msra.mxu1 %v270_v18 }
  0x48   :  { %1750 = vmatprep.mubr.f32.mxu0 %v172_v41  ;;  %1777 = vmatprep.subr.mxu1 %v277_v44 }
  0x49   :  { %1788 = vmatprep.subr.mxu0 %v2298_v14  ;;  %1751 = vmatmul.mubr.f32.vlgmr.msra.gmra.mxu0 %v182_v50 }
  0x4a   :  { %1778 = vmatpush3.msra.mxu1 %v277_v44  ;;  %1789 = vmatpush3.msra.mxu0 %v2298_v14  ;;  %v3015_v14 = vand.u32 4294901760, %v2421_v25  ;;  %v777_v44 = vld [vmem:[#allocation7 + $0x20] sm:$0xff] }
  0x4b   :  { %1779 = vmatprep.subr.mxu1 %v284_v54  ;;  %1790 = vmatprep.subr.mxu0 %v2301_v15 }
  0x4c   :  { %1780 = vmatpush3.msra.mxu1 %v284_v54  ;;  %1791 = vmatpush3.msra.mxu0 %v2301_v15  ;;  %v3016_v15 = vand.u32 4294901760, %v2430_v32 }
  0x4d   :  { %1781 = vmatprep.subr.mxu1 %v291_v63  ;;  %1792 = vmatprep.subr.mxu0 %v2306_v17 }
  0x4e   :  { %1782 = vmatpush3.msra.mxu1 %v291_v63  ;;  %1793 = vmatpush3.msra.mxu0 %v2306_v17  ;;  %v784_v17 = vld [vmem:[#allocation7 + $0x58] sm:$0xff] }
  0x4f   :  { %1783 = vmatprep.subr.mxu1 %v298_v0  ;;  %1794 = vmatprep.subr.mxu0 %v2310_v19 }
  0x50   :  { %1784 = vmatpush3.msra.mxu1 %v298_v0  ;;  %1785 = vmatprep.mubr.f32.mxu1 %v2397_v61  ;;  %v2757_v0 = vand.u32 4294901760, %v777_v44 }
  0x51   :  { %1795 = vmatpush3.msra.mxu0 %v2310_v19  ;;  %1786 = vmatmul.mubr.f32.vlgmr.msra.gmra.mxu1 %v2400_v62 }
  0x52   :  { %1796 = vmatprep.subr.mxu0 %v2313_v20  ;;  %1823 = vmatprep.subr.mxu1 %v2284_v3 }
  0x53   :  { %1797 = vmatpush3.msra.mxu0 %v2313_v20  ;;  %1824 = vmatpush3.msra.mxu1 %v2284_v3 }
  0x54   :  { %1798 = vmatprep.subr.mxu0 %v2337_v29  ;;  %1825 = vmatprep.subr.mxu1 %v2286_v4 }
  0x55   :  { %1799 = vmatpush3.msra.mxu0 %v2337_v29  ;;  %1826 = vmatpush3.msra.mxu1 %v2286_v4 }
  0x56   :  { %1800 = vmatprep.subr.mxu0 %v2347_v33  ;;  %1827 = vmatprep.subr.mxu1 %v2288_v5 }
  0x57   :  { %1801 = vmatpush3.msra.mxu0 %v2347_v33  ;;  %1828 = vmatpush3.msra.mxu1 %v2288_v5 }
  0x58   :  { %1802 = vmatprep.subr.mxu0 %v2365_v43  ;;  %1829 = vmatprep.subr.mxu1 %v2290_v9 }
  0x59   :  { %1803 = vmatpush3.msra.mxu0 %v2365_v43  ;;  %1830 = vmatpush3.msra.mxu1 %v2290_v9 }
  0x5a   :  { %1804 = vmatprep.subr.mxu0 %v2371_v46  ;;  %1831 = vmatprep.subr.mxu1 %v2292_v10 }
  0x5b   :  { %1805 = vmatpush3.msra.mxu0 %v2371_v46  ;;  %1832 = vmatpush3.msra.mxu1 %v2292_v10 }
  0x5c   :  { %1806 = vmatprep.subr.mxu0 %v2383_v53  ;;  %1833 = vmatprep.subr.mxu1 %v2294_v11 }
  0x5d   :  { %1807 = vmatpush3.msra.mxu0 %v2383_v53  ;;  %1834 = vmatpush3.msra.mxu1 %v2294_v11 }
  0x5e   :  { %1808 = vmatprep.subr.mxu0 %v2395_v60  ;;  %1835 = vmatprep.subr.mxu1 %v2303_v16 }
  0x5f   :  { %1809 = vmatpush3.msra.mxu0 %v2395_v60  ;;  %1836 = vmatpush3.msra.mxu1 %v2303_v16 }
  0x60   :  { %1810 = vmatprep.subr.mxu0 %v2409_v6  ;;  %1837 = vmatprep.subr.mxu1 %v2325_v24 }
  0x61   :  { %1811 = vmatpush3.msra.mxu0 %v2409_v6  ;;  %1838 = vmatpush3.msra.mxu1 %v2325_v24 }
  0x62   :  { %1812 = vmatprep.subr.mxu0 %v2424_v30  ;;  %1839 = vmatprep.subr.mxu1 %v2331_v27 }
  0x63   :  { %1813 = vmatpush3.msra.mxu0 %v2424_v30  ;;  %1840 = vmatpush3.msra.mxu1 %v2331_v27 }
  0x64   :  { %1814 = vmatprep.subr.mxu0 %v2442_v40  ;;  %1841 = vmatprep.subr.mxu1 %v2350_v34 }
  0x65   :  { %1815 = vmatpush3.msra.mxu0 %v2442_v40  ;;  %1842 = vmatpush3.msra.mxu1 %v2350_v34 }
  0x66   :  { %1816 = vmatprep.subr.mxu0 %v2454_v51  ;;  %1843 = vmatprep.subr.mxu1 %v2368_v45 }
  0x67   :  { %1817 = vmatpush3.msra.mxu0 %v2454_v51  ;;  %1844 = vmatpush3.msra.mxu1 %v2368_v45  ;;  %v2728_v51 = vand.u32 4294901760, %v780_v48 }
  0x68   :  { %1818 = vmatprep.subr.mxu0 %v2464_v59  ;;  %1845 = vmatprep.subr.mxu1 %v2374_v47 }
  0x69   :  { %1819 = vmatpush3.msra.mxu0 %v2464_v59  ;;  %1820 = vmatprep.mubr.f32.mxu0 %v2421_v25  ;;  %v2733_v2 = vsub.f32 %v780_v48, %v2728_v51 }
  0x6a   :  { %1846 = vmatpush3.msra.mxu1 %v2374_v47  ;;  %1821 = vmatmul.mubr.f32.vlgmr.msra.gmra.mxu0 %v2430_v32 }
  0x6b   :  { %1847 = vmatprep.subr.mxu1 %v2389_v57  ;;  %1858 = vmatprep.subr.mxu0 %v2317_v21  ;;  %v2740_v35 = vand.u32 4294901760, %v2733_v2 }
  0x6c   :  { %1848 = vmatpush3.msra.mxu1 %v2389_v57  ;;  %1859 = vmatpush3.msra.mxu0 %v2317_v21  ;;  %v2646_v21 = vand.u32 4294901760, %v784_v17 }
  0x6d   :  { %1849 = vmatprep.subr.mxu1 %v2412_v8  ;;  %1860 = vmatprep.subr.mxu0 %v2320_v22  ;;  %3019 = vst [vmem:[#allocation14_spill] sm:$0xff] %v2740_v35  ;;  %v957_v55 = vsub.f32 %v2733_v2, %v2740_v35 }
  0x6e   :  { %1850 = vmatpush3.msra.mxu1 %v2412_v8  ;;  %1861 = vmatpush3.msra.mxu0 %v2320_v22  ;;  %v783_v22 = vld [vmem:[#allocation7 + $0x50] sm:$0xff] }
  0x6f   :  { %1851 = vmatprep.subr.mxu1 %v2427_v31  ;;  %1862 = vmatprep.subr.mxu0 %v2323_v23 }
  0x70   :  { %1852 = vmatpush3.msra.mxu1 %v2427_v31  ;;  %1863 = vmatpush3.msra.mxu0 %v2323_v23  ;;  %v782_v23 = vld [vmem:[#allocation7 + $0x48] sm:$0xff] }
  0x71   :  { %1853 = vmatprep.subr.mxu1 %v2439_v38  ;;  %1864 = vmatprep.subr.mxu0 %v2329_v26  ;;  %v2658_v29 = vand.u32 4294901760, %v782_v23 }
  0x72   :  { %1854 = vmatpush3.msra.mxu1 %v2439_v38  ;;  %1855 = vmatprep.mubr.f32.mxu1 %v3015_v14  ;;  %v776_v14 = vld [vmem:[#allocation7 + $0x18] sm:$0xff] }
  0x73   :  { %1865 = vmatpush3.msra.mxu0 %v2329_v26  ;;  %1856 = vmatmul.mubr.f32.vlgmr.msra.gmra.mxu1 %v3016_v15  ;;  %v958_v15 = vand.u32 4294901760, %v957_v55 }
  0x74   :  { %1866 = vmatprep.subr.mxu0 %v2334_v28  ;;  %1893 = vmatprep.subr.mxu1 %v2284_v3 }
  0x75   :  { %1867 = vmatpush3.msra.mxu0 %v2334_v28  ;;  %1894 = vmatpush3.msra.mxu1 %v2284_v3  ;;  %v788_v3 = vld [vmem:[#allocation7 + $0x78] sm:$0xff]  ;;  %v2656_v28 = vand.u32 4294901760, %v783_v22 }
  0x76   :  { %1868 = vmatprep.subr.mxu0 %v2356_v39  ;;  %1895 = vmatprep.subr.mxu1 %v2286_v4 }
  0x77   :  { %1869 = vmatpush3.msra.mxu0 %v2356_v39  ;;  %1896 = vmatpush3.msra.mxu1 %v2286_v4  ;;  %v2634_v4 = vand.u32 4294901760, %v788_v3  ;;  %v2667_v39 = vsub.f32 %v784_v17, %v2646_v21  ;;  %v2678_v46 = vsub.f32 %v783_v22, %v2656_v28  ;;  %v775_v17 = vld [vmem:[#allocation7 + $0x10] sm:$0xff] }
  0x78   :  { %1870 = vmatprep.subr.mxu0 %v2362_v42  ;;  %1897 = vmatprep.subr.mxu1 %v2288_v5 }
  0x79   :  { %1871 = vmatpush3.msra.mxu0 %v2362_v42  ;;  %1898 = vmatpush3.msra.mxu1 %v2288_v5  ;;  %v787_v5 = vld [vmem:[#allocation7 + $0x70] sm:$0xff] }
  0x7a   :  { %1872 = vmatprep.subr.mxu0 %v2380_v52  ;;  %1899 = vmatprep.subr.mxu1 %v2290_v9 }
  0x7b   :  { %1873 = vmatpush3.msra.mxu0 %v2380_v52  ;;  %1900 = vmatpush3.msra.mxu1 %v2290_v9  ;;  %v2637_v9 = vsub.f32 %v788_v3, %v2634_v4 }
  0x7c   :  { %1874 = vmatprep.subr.mxu0 %v2392_v58  ;;  %1901 = vmatprep.subr.mxu1 %v2292_v10 }
  0x7d   :  { %1875 = vmatpush3.msra.mxu0 %v2392_v58  ;;  %1902 = vmatpush3.msra.mxu1 %v2292_v10  ;;  %v2639_v10 = vand.u32 4294901760, %v787_v5  ;;  %v2650_v26 = vand.u32 4294901760, %v2637_v9 }
  0x7e   :  { %1876 = vmatprep.subr.mxu0 %v2406_v1  ;;  %1903 = vmatprep.subr.mxu1 %v2294_v11 }
  0x7f   :  { %1877 = vmatpush3.msra.mxu0 %v2406_v1  ;;  %1904 = vmatpush3.msra.mxu1 %v2294_v11  ;;  %v786_v11 = vld [vmem:[#allocation7 + $0x68] sm:$0xff]  ;;  %v901_v43 = vsub.f32 %v2637_v9, %v2650_v26 }
  0x80   :  { %1878 = vmatprep.subr.mxu0 %v2418_v13  ;;  %1905 = vmatprep.subr.mxu1 %v2303_v16  ;;  %v2642_v19 = vand.u32 4294901760, %v786_v11 }
  0x81   :  { %1879 = vmatpush3.msra.mxu0 %v2418_v13  ;;  %1906 = vmatpush3.msra.mxu1 %v2303_v16  ;;  %v785_v16 = vld [vmem:[#allocation7 + $0x60] sm:$0xff]  ;;  %v902_v58 = vand.u32 4294901760, %v901_v43  ;;  %v2778_v43 = vand.u32 4294901760, %v775_v17 }
  0x82   :  { %1880 = vmatprep.subr.mxu0 %v2436_v37  ;;  %1907 = vmatprep.subr.mxu1 %v2325_v24  ;;  %v2644_v20 = vand.u32 4294901760, %v785_v16  ;;  %v2661_v33 = vsub.f32 %v786_v11, %v2642_v19  ;;  %v2767_v11 = vsub.f32 %v777_v44, %v2757_v0 }
  0x83   :  { %1881 = vmatpush3.msra.mxu0 %v2436_v37  ;;  %1908 = vmatpush3.msra.mxu1 %v2325_v24  ;;  %v781_v24 = vld [vmem:[#allocation7 + $0x40] sm:$0xff] }
  0x84   :  { %1882 = vmatprep.subr.mxu0 %v2449_v49  ;;  %1909 = vmatprep.subr.mxu1 %v2331_v27  ;;  %v2670_v42 = vand.u32 4294901760, %v781_v24  ;;  %v2685_v52 = vand.u32 4294901760, %v2661_v33 }
  0x85   :  { %1883 = vmatpush3.msra.mxu0 %v2449_v49  ;;  %1910 = vmatpush3.msra.mxu1 %v2331_v27  ;;  %v2653_v27 = vsub.f32 %v787_v5, %v2639_v10 }
  0x86   :  { %1884 = vmatprep.subr.mxu0 %v2461_v56  ;;  %1911 = vmatprep.subr.mxu1 %v2350_v34  ;;  %v915_v1 = vsub.f32 %v2661_v33, %v2685_v52 }
  0x87   :  { %1885 = vmatpush3.msra.mxu0 %v2461_v56  ;;  %1912 = vmatpush3.msra.mxu1 %v2350_v34  ;;  %v2664_v34 = vsub.f32 %v785_v16, %v2644_v20  ;;  %v779_v56 = vld [vmem:[#allocation7 + $0x30] sm:$0xff]  ;;  %v2770_v16 = vand.u32 4294901760, %v776_v14 }
  0x88   :  { %1886 = vmatprep.subr.mxu0 %v2477_v12  ;;  %1913 = vmatprep.subr.mxu1 %v2368_v45  ;;  %v916_v30 = vand.u32 4294901760, %v915_v1  ;;  %v2735_v7 = vand.u32 4294901760, %v779_v56 }
  0x89   :  { %1887 = vmatpush3.msra.mxu0 %v2477_v12  ;;  %1914 = vmatpush3.msra.mxu1 %v2368_v45  ;;  %v2675_v45 = vand.u32 4294901760, %v2653_v27  ;;  %v2688_v53 = vand.u32 4294901760, %v2664_v34  ;;  %v778_v12 = vld [vmem:[#allocation7 + $0x28] sm:$0xff] }
  0x8a   :  { %1888 = vmatprep.subr.mxu0 %v2484_v36  ;;  %1915 = vmatprep.subr.mxu1 %v2374_v47  ;;  %v2745_v41 = vand.u32 4294901760, %v778_v12 }
  0x8b   :  { %1889 = vmatpush3.msra.mxu0 %v2484_v36  ;;  %1890 = vmatprep.mubr.f32.mxu0 %v2397_v61  ;;  %v908_v60 = vsub.f32 %v2653_v27, %v2675_v45  ;;  %v922_v6 = vsub.f32 %v2664_v34, %v2688_v53  ;;  %v2743_v36 = vsub.f32 %v779_v56, %v2735_v7 }
  0x8c   :  { %1916 = vmatpush3.msra.mxu1 %v2374_v47  ;;  %1891 = vmatmul.mubr.f32.vlgmr.msra.gmra.mxu0 %v2400_v62  ;;  %v2682_v47 = vsub.f32 %v782_v23, %v2658_v29  ;;  %v2755_v63 = vsub.f32 %v778_v12, %v2745_v41 }
  0x8d   :  { %1917 = vmatprep.subr.mxu1 %v2389_v57  ;;  %1925 = vmatprep.mubr.f32.mxu1 %v2397_v61  ;;  %v2697_v61 = vand.u32 4294901760, %v2678_v46  ;;  %v2752_v54 = vand.u32 4294901760, %v2743_v36 }
  0x8e   :  { %1918 = vmatpush3.msra.mxu1 %v2389_v57  ;;  %1928 = vmatprep.subr.mxu0 %v2634_v4  ;;  %v2691_v57 = vand.u32 4294901760, %v2667_v39  ;;  %v2711_v25 = vand.u32 4294901760, %v2682_v47  ;;  %v2764_v5 = vand.u32 4294901760, %v2755_v63 }
  0x8f   :  { %1919 = vmatprep.subr.mxu1 %v2412_v8  ;;  %1929 = vmatpush3.msra.mxu0 %v2634_v4  ;;  %v936_v32 = vsub.f32 %v2678_v46, %v2697_v61  ;;  %3020 = vst [vmem:[#allocation15_spill] sm:$0xff] %v2752_v54  ;;  %v964_v3 = vsub.f32 %v2743_v36, %v2752_v54 }
  0x90   :  { %1920 = vmatpush3.msra.mxu1 %v2412_v8  ;;  %1930 = vmatprep.subr.mxu0 %v2639_v10  ;;  %v909_v8 = vand.u32 4294901760, %v908_v60  ;;  %v929_v13 = vsub.f32 %v2667_v39, %v2691_v57  ;;  %3017 = vst [vmem:[#allocation12_spill] sm:$0xff] %v2711_v25  ;;  %v943_v40 = vsub.f32 %v2682_v47, %v2711_v25  ;;  %3021 = vst [vmem:[#allocation16_spill] sm:$0xff] %v2764_v5  ;;  %v774_v60 = vld [vmem:[#allocation7 + $0x8] sm:$0xff] }
  0x91   :  { %1921 = vmatprep.subr.mxu1 %v2427_v31  ;;  %1931 = vmatpush3.msra.mxu0 %v2639_v10  ;;  %v937_v49 = vand.u32 4294901760, %v936_v32  ;;  %v965_v22 = vand.u32 4294901760, %v964_v3  ;;  %v971_v23 = vsub.f32 %v2755_v63, %v2764_v5 }
  0x92   :  { %1922 = vmatpush3.msra.mxu1 %v2427_v31  ;;  %1932 = vmatprep.subr.mxu0 %v2642_v19  ;;  %v923_v31 = vand.u32 4294901760, %v922_v6  ;;  %v944_v59 = vand.u32 4294901760, %v943_v40 }
  0x93   :  { %1923 = vmatprep.subr.mxu1 %v2439_v38  ;;  %1933 = vmatpush3.msra.mxu0 %v2642_v19  ;;  %v972_v1 = vand.u32 4294901760, %v971_v23 }
  0x94   :  { %1924 = vmatpush3.msra.mxu1 %v2439_v38  ;;  %1934 = vmatprep.subr.mxu0 %v2644_v20  ;;  %v930_v38 = vand.u32 4294901760, %v929_v13  ;;  %v2789_v13 = vand.u32 4294901760, %v774_v60 }
  0x95   :  { %1926 = vmatmul.mubr.f32.vlgmr.msra.gmra.mxu1 %v2400_v62  ;;  %v2701_v62 = vsub.f32 %v781_v24, %v2670_v42  ;;  %1935 = vmatpush3.msra.mxu0 %v2644_v20  ;;  %v2776_v24 = vand.u32 4294901760, %v2767_v11 }
  0x96   :  { %1963 = vmatprep.subr.mxu1 %v902_v58  ;;  %1936 = vmatprep.subr.mxu0 %v2646_v21  ;;  %v2800_v40 = vsub.f32 %v774_v60, %v2789_v13 }
  0x97   :  { %1964 = vmatpush3.msra.mxu1 %v902_v58  ;;  %1937 = vmatpush3.msra.mxu0 %v2646_v21  ;;  %v2718_v37 = vand.u32 4294901760, %v2701_v62  ;;  %3022 = vst [vmem:[#allocation17_spill] sm:$0xff] %v2776_v24  ;;  %v2781_v58 = vsub.f32 %v776_v14, %v2770_v16  ;;  %v978_v6 = vsub.f32 %v2767_v11, %v2776_v24 }
  0x98   :  { %1965 = vmatprep.subr.mxu1 %v909_v8  ;;  %1938 = vmatprep.subr.mxu0 %v2656_v28  ;;  %v2811_v56 = vand.u32 4294901760, %v2800_v40 }
  0x99   :  { %3018 = vst [vmem:[#allocation13_spill] sm:$0xff] %v2718_v37  ;;  %1966 = vmatpush3.msra.mxu1 %v909_v8  ;;  %1939 = vmatpush3.msra.mxu0 %v2656_v28  ;;  %v950_v50 = vsub.f32 %v2701_v62, %v2718_v37  ;;  %v2787_v8 = vsub.f32 %v775_v17, %v2778_v43  ;;  %v979_v32 = vand.u32 4294901760, %v978_v6 }
  0x9a   :  { %1967 = vmatprep.subr.mxu1 %v916_v30  ;;  %1940 = vmatprep.subr.mxu0 %v2658_v29  ;;  %3025 = vst [vmem:[#allocation20_spill] sm:$0xff] %v2811_v56  ;;  %v999_v44 = vsub.f32 %v2800_v40, %v2811_v56 }
  0x9b   :  { %1968 = vmatpush3.msra.mxu1 %v916_v30  ;;  %1941 = vmatpush3.msra.mxu0 %v2658_v29  ;;  %v951_v18 = vand.u32 4294901760, %v950_v50  ;;  %v2793_v30 = vand.u32 4294901760, %v2781_v58 }
  0x9c   :  { %1969 = vmatprep.subr.mxu1 %v923_v31  ;;  %1942 = vmatprep.subr.mxu0 %v2670_v42  ;;  %v1000_v14 = vand.u32 4294901760, %v999_v44 }
  0x9d   :  { %1970 = vmatpush3.msra.mxu1 %v923_v31  ;;  %1943 = vmatpush3.msra.mxu0 %v2670_v42  ;;  %3023 = vst [vmem:[#allocation18_spill] sm:$0xff] %v2793_v30  ;;  %v773_v31 = vld [vmem:[#allocation7] sm:$0xff] }
  0x9e   :  { %1971 = vmatprep.subr.mxu1 %v930_v38  ;;  %1944 = vmatprep.subr.mxu0 %v2728_v51  ;;  %v2802_v48 = vand.u32 4294901760, %v773_v31 }
  0x9f   :  { %1972 = vmatpush3.msra.mxu1 %v930_v38  ;;  %1945 = vmatpush3.msra.mxu0 %v2728_v51  ;;  %v2797_v38 = vand.u32 4294901760, %v2787_v8 }
  0xa0   :  { %1973 = vmatprep.subr.mxu1 %v937_v49  ;;  %1946 = vmatprep.subr.mxu0 %v2735_v7 }
  0xa1   :  { %1974 = vmatpush3.msra.mxu1 %v937_v49  ;;  %1947 = vmatpush3.msra.mxu0 %v2735_v7  ;;  %3024 = vst [vmem:[#allocation19_spill] sm:$0xff] %v2797_v38  ;;  %v985_v49 = vsub.f32 %v2781_v58, %v2793_v30  ;;  %v992_v50 = vsub.f32 %v2787_v8, %v2797_v38 }
  0xa2   :  { %1975 = vmatprep.subr.mxu1 %v944_v59  ;;  %1948 = vmatprep.subr.mxu0 %v2745_v41 }
  0xa3   :  { %1976 = vmatpush3.msra.mxu1 %v944_v59  ;;  %1949 = vmatpush3.msra.mxu0 %v2745_v41  ;;  %v2814_v59 = vsub.f32 %v773_v31, %v2802_v48  ;;  %v986_v12 = vand.u32 4294901760, %v985_v49 }
  0xa4   :  { %1977 = vmatprep.subr.mxu1 %v951_v18  ;;  %1950 = vmatprep.subr.mxu0 %v2757_v0 }
  0xa5   :  { %1978 = vmatpush3.msra.mxu1 %v951_v18  ;;  %1951 = vmatpush3.msra.mxu0 %v2757_v0  ;;  %v993_v18 = vand.u32 4294901760, %v992_v50  ;;  %v2821_v55 = vand.u32 4294901760, %v2814_v59 }
  0xa6   :  { %1979 = vmatprep.subr.mxu1 %v958_v15  ;;  %1952 = vmatprep.subr.mxu0 %v2770_v16 }
  0xa7   :  { %1980 = vmatpush3.msra.mxu1 %v958_v15  ;;  %1953 = vmatpush3.msra.mxu0 %v2770_v16  ;;  %3026 = vst [vmem:[#allocation21_spill] sm:$0xff] %v2821_v55  ;;  %v1006_v15 = vsub.f32 %v2814_v59, %v2821_v55 }
  0xa8   :  { %1981 = vmatprep.subr.mxu1 %v965_v22  ;;  %1954 = vmatprep.subr.mxu0 %v2778_v43 }
  0xa9   :  { %1982 = vmatpush3.msra.mxu1 %v965_v22  ;;  %1955 = vmatpush3.msra.mxu0 %v2778_v43  ;;  %v1007_v3 = vand.u32 4294901760, %v1006_v15  ;;  %v1500_v22 = vld [vmem:[%s2989_s2] ss:$0 sm:$0xff] }
  0xaa   :  { %1983 = vmatprep.subr.mxu1 %v972_v1  ;;  %1956 = vmatprep.subr.mxu0 %v2789_v13 }
  0xab   :  { %1984 = vmatpush3.msra.mxu1 %v972_v1  ;;  %1957 = vmatpush3.msra.mxu0 %v2789_v13 }
  0xac   :  { %1985 = vmatprep.subr.mxu1 %v979_v32  ;;  %1958 = vmatprep.subr.mxu0 %v2802_v48 }
  0xad   :  { %1986 = vmatpush3.msra.mxu1 %v979_v32  ;;  %1959 = vmatpush3.msra.mxu0 %v2802_v48 }
  0xae   :  { %1987 = vmatprep.subr.mxu1 %v986_v12  ;;  %1998 = vmatprep.subr.mxu0 %v2637_v9 }
  0xaf   :  { %1988 = vmatpush3.msra.mxu1 %v986_v12 }
  0xb0   :  { %1989 = vmatprep.subr.mxu1 %v993_v18 }
  0xb1   :  { %1990 = vmatpush3.msra.mxu1 %v993_v18 }
  0xb2   :  { %1991 = vmatprep.subr.mxu1 %v1000_v14 }
  0xb3   :  { %1992 = vmatpush3.msra.mxu1 %v1000_v14 }
  0xb4   :  { %1993 = vmatprep.subr.mxu1 %v1007_v3 }
  0xb5   :  { %1994 = vmatpush3.msra.mxu1 %v1007_v3 }
  0xb6   :  { %2033 = vmatprep.subr.mxu1 %v2634_v4 }
 0x109   :  { %v1752_v17 = vpop.f32.mrf.mxu0 }
 0x10a   :  { %v185_v6 = vadd.f32 %v1752_v17, %v1500_v22 }
 0x10b   :  { %v174_v23 = vpop.f32.mrf.mxu0 }
 0x10c   :  { %v175_v32 = vadd.f32 %v1500_v22, %v174_v23 }
 0x111   :  { %v1787_v60 = vpop.f32.mrf.mxu1 }
 0x112   :  { %v342_v12 = vadd.f32 %v1787_v60, %v185_v6 }
 0x113   :  { %v335_v31 = vpop.f32.mrf.mxu1 }
 0x114   :  { %v336_v44 = vadd.f32 %v335_v31, %v175_v32 }
 0x12a   :  { %v1822_v1 = vpop.f32.mrf.mxu0 }
 0x12b   :  { %v453_v14 = vadd.f32 %v1822_v1, %v342_v12 }
 0x12c   :  { %v445_v49 = vpop.f32.mrf.mxu0 }
 0x12d   :  { %v446_v3 = vadd.f32 %v445_v49, %v336_v44 }
 0x133   :  { %v1857_v50 = vpop.f32.mrf.mxu1 }
 0x134   :  { %v550_v55 = vadd.f32 %v1857_v50, %v453_v14 }
 0x135   :  { %v541_v15 = vpop.f32.mrf.mxu1 }
 0x136   :  { %v542_v38 = vadd.f32 %v541_v15, %v446_v3 }
 0x14c   :  { %v1892_v18 = vpop.f32.mrf.mxu0 }
 0x14d   :  { %v675_v30 = vadd.f32 %v1892_v18, %v550_v55 }
 0x14e   :  { %v668_v56 = vpop.f32.mrf.mxu0 }
 0x14f   :  { %v669_v5 = vadd.f32 %v668_v56, %v542_v38 }
 0x155   :  { %v1927_v24 = vpop.f32.mrf.mxu1 }
 0x156   :  { %v768_v54 = vadd.f32 %v1927_v24, %v675_v30 }
 0x157   :  { %v761_v35 = vpop.f32.mrf.mxu1 }
 0x158   :  { %v772_v37 = vmax.f32 %v768_v54, 0.0  ;;  %v762_v17 = vadd.f32 %v761_v35, %v669_v5 }
 0x15a   :  { %v2831_v25 = vand.u32 4294901760, %v772_v37  ;;  %v771_v22 = vmax.f32 %v762_v17, 0.0 }
 0x15c   :  { %v2834_v23 = vsub.f32 %v772_v37, %v2831_v25  ;;  %v2836_v60 = vand.u32 4294901760, %v771_v22 }
 0x15e   :  { %v889_v1 = vand.u32 4294901760, %v2834_v23  ;;  %v878_v6 = vsub.f32 %v771_v22, %v2836_v60  ;;  %1995 = vmatprep.mubr.f32.mxu1 %v2836_v60 }
 0x15f   :  { %1996 = vmatmul.mubr.f32.vlgmr.msra.gmra.mxu1 %v2831_v25 }
 0x160   :  { %2034 = vmatpush3.msra.mxu1 %v2634_v4  ;;  %v879_v54 = vand.u32 4294901760, %v878_v6  ;;  %v890_v35 = vsub.f32 %v2834_v23, %v889_v1 }
 0x161   :  { %2035 = vmatprep.subr.mxu1 %v2639_v10 }
 0x162   :  { %2036 = vmatpush3.msra.mxu1 %v2639_v10  ;;  %2065 = vmatprep.mubr.f32.mxu1 %v879_v54  ;;  %v880_v37 = vsub.f32 %v878_v6, %v879_v54  ;;  %v891_v24 = vand.u32 4294901760, %v890_v35 }
 0x163   :  { %2037 = vmatprep.subr.mxu1 %v2642_v19 }
 0x164   :  { %2038 = vmatpush3.msra.mxu1 %v2642_v19  ;;  %v881_v5 = vand.u32 4294901760, %v880_v37 }
 0x165   :  { %2039 = vmatprep.subr.mxu1 %v2644_v20 }
 0x166   :  { %2040 = vmatpush3.msra.mxu1 %v2644_v20  ;;  %1960 = vmatprep.mubr.f32.mxu0 %v881_v5 }
 0x167   :  { %2041 = vmatprep.subr.mxu1 %v2646_v21  ;;  %1961 = vmatmul.mubr.f32.vlgmr.msra.gmra.mxu0 %v891_v24 }
 0x168   :  { %1999 = vmatpush3.msra.mxu0 %v2637_v9  ;;  %2042 = vmatpush3.msra.mxu1 %v2646_v21  ;;  %v3028_v9 = vld [vmem:[#allocation13_spill] sm:$0xff] }
 0x169   :  { %2000 = vmatprep.subr.mxu0 %v2653_v27  ;;  %2030 = vmatprep.mubr.f32.mxu0 %v878_v6 }
 0x16a   :  { %2043 = vmatprep.subr.mxu1 %v2656_v28  ;;  %2001 = vmatpush3.msra.mxu0 %v2653_v27  ;;  %v3034_v27 = vld [vmem:[#allocation19_spill] sm:$0xff] }
 0x16b   :  { %2044 = vmatpush3.msra.mxu1 %v2656_v28  ;;  %2002 = vmatprep.subr.mxu0 %v2661_v33 }
 0x16c   :  { %2045 = vmatprep.subr.mxu1 %v2658_v29  ;;  %2003 = vmatpush3.msra.mxu0 %v2661_v33 }
 0x16d   :  { %2046 = vmatpush3.msra.mxu1 %v2658_v29  ;;  %2004 = vmatprep.subr.mxu0 %v2664_v34 }
 0x16e   :  { %2047 = vmatprep.subr.mxu1 %v2670_v42  ;;  %2005 = vmatpush3.msra.mxu0 %v2664_v34  ;;  %v1501_v34 = vld [vmem:[%s2991_s4] ss:$0 sm:$0xff]  ;;  %s2235_s4 = smov [#allocation8]  }
 0x16f   :  { %2048 = vmatpush3.msra.mxu1 %v2670_v42  ;;  %2006 = vmatprep.subr.mxu0 %v2667_v39  ;;  %s1487_s10 = sshll.u32 %s2235_s4, 4  ;;  %s1488_s10 = int_to_ptr.vmem [resolvable:$true] %s1487_s10 }
 0x170   :  { %2049 = vmatprep.subr.mxu1 %v2728_v51  ;;  %2007 = vmatpush3.msra.mxu0 %v2667_v39  ;;  %s2204_s11 = scalar_lea.vmem %s1488_s10, 256  ;;  %p2209_p2 = scmp.lt.s32.totalorder %s1488_s10, %s1488_s10 }
 0x171   :  { %2050 = vmatpush3.msra.mxu1 %v2728_v51  ;;  %2008 = vmatprep.subr.mxu0 %v2678_v46  ;;  %p2205_p1 = scmp.ne.s32.totalorder %s1488_s10, %s2204_s11  ;;  %p2210_p3 = scmp.lt.s32.totalorder %s2204_s11, %s2204_s11 }
 0x172   :  { %2051 = vmatprep.subr.mxu1 %v2735_v7  ;;  %2009 = vmatpush3.msra.mxu0 %v2678_v46 }
 0x173   :  { %2052 = vmatpush3.msra.mxu1 %v2735_v7  ;;  %2010 = vmatprep.subr.mxu0 %v2682_v47  ;;  %p2211_p4 = por %p2210_p3, %p2209_p2 }
 0x174   :  { %2053 = vmatprep.subr.mxu1 %v2745_v41  ;;  %2011 = vmatpush3.msra.mxu0 %v2682_v47 }
 0x175   :  { %2054 = vmatpush3.msra.mxu1 %v2745_v41  ;;  %2012 = vmatprep.subr.mxu0 %v2701_v62  ;;  %p2212_p5 = pnand %p2211_p4, %p2205_p1 }
 0x176   :  { %2055 = vmatprep.subr.mxu1 %v2757_v0  ;;  %2013 = vmatpush3.msra.mxu0 %v2701_v62 }
 0x177   :  { %2056 = vmatpush3.msra.mxu1 %v2757_v0  ;;  %2014 = vmatprep.subr.mxu0 %v2733_v2 }
 0x178   :  { %2057 = vmatprep.subr.mxu1 %v2770_v16  ;;  %2015 = vmatpush3.msra.mxu0 %v2733_v2 }
 0x179   :  { %2058 = vmatpush3.msra.mxu1 %v2770_v16  ;;  %2016 = vmatprep.subr.mxu0 %v2743_v36 }
 0x17a   :  { %2059 = vmatprep.subr.mxu1 %v2778_v43  ;;  %2017 = vmatpush3.msra.mxu0 %v2743_v36 }
 0x17b   :  { %2060 = vmatpush3.msra.mxu1 %v2778_v43  ;;  %2018 = vmatprep.subr.mxu0 %v2755_v63 }
 0x17c   :  { %2061 = vmatprep.subr.mxu1 %v2789_v13  ;;  %2019 = vmatpush3.msra.mxu0 %v2755_v63 }
 0x17d   :  { %2062 = vmatpush3.msra.mxu1 %v2789_v13  ;;  %2020 = vmatprep.subr.mxu0 %v2767_v11 }
 0x17e   :  { %2063 = vmatprep.subr.mxu1 %v2802_v48  ;;  %2021 = vmatpush3.msra.mxu0 %v2767_v11 }
 0x17f   :  { %2064 = vmatpush3.msra.mxu1 %v2802_v48  ;;  %2022 = vmatprep.subr.mxu0 %v2781_v58 }
 0x180   :  { %2066 = vmatmul.mubr.f32.vlgmr.msra.gmra.mxu1 %v889_v1  ;;  %2103 = vmatprep.subr.mxu1 %v2634_v4 }
 0x181   :  { %2023 = vmatpush3.msra.mxu0 %v2781_v58  ;;  %2104 = vmatpush3.msra.mxu1 %v2634_v4  ;;  %v3027_v4 = vld [vmem:[#allocation12_spill] sm:$0xff] }
 0x182   :  { %2135 = vmatprep.mubr.f32.mxu1 %v2836_v60  ;;  %2024 = vmatprep.subr.mxu0 %v2787_v8 }
 0x183   :  { %2105 = vmatprep.subr.mxu1 %v2639_v10  ;;  %2025 = vmatpush3.msra.mxu0 %v2787_v8 }
 0x184   :  { %2106 = vmatpush3.msra.mxu1 %v2639_v10  ;;  %2026 = vmatprep.subr.mxu0 %v2800_v40  ;;  %v3029_v10 = vld [vmem:[#allocation14_spill] sm:$0xff] }
 0x185   :  { %2107 = vmatprep.subr.mxu1 %v2642_v19  ;;  %2027 = vmatpush3.msra.mxu0 %v2800_v40 }
 0x186   :  { %2108 = vmatpush3.msra.mxu1 %v2642_v19  ;;  %2028 = vmatprep.subr.mxu0 %v2814_v59  ;;  %v3030_v19 = vld [vmem:[#allocation15_spill] sm:$0xff] }
 0x187   :  { %2109 = vmatprep.subr.mxu1 %v2644_v20  ;;  %2029 = vmatpush3.msra.mxu0 %v2814_v59 }
 0x188   :  { %2110 = vmatpush3.msra.mxu1 %v2644_v20  ;;  %2031 = vmatmul.mubr.f32.vlgmr.msra.gmra.mxu0 %v2834_v23  ;;  %v3031_v20 = vld [vmem:[#allocation16_spill] sm:$0xff] }
 0x189   :  { %2068 = vmatprep.subr.mxu0 %v2650_v26  ;;  %2111 = vmatprep.subr.mxu1 %v2646_v21 }
 0x18a   :  { %2069 = vmatpush3.msra.mxu0 %v2650_v26  ;;  %2100 = vmatprep.mubr.f32.mxu0 %v2836_v60  ;;  %v3033_v26 = vld [vmem:[#allocation18_spill] sm:$0xff] }
 0x18b   :  { %2112 = vmatpush3.msra.mxu1 %v2646_v21  ;;  %2070 = vmatprep.subr.mxu0 %v2675_v45  ;;  %v3032_v21 = vld [vmem:[#allocation17_spill] sm:$0xff] }
 0x18c   :  { %2113 = vmatprep.subr.mxu1 %v2656_v28  ;;  %2071 = vmatpush3.msra.mxu0 %v2675_v45 }
 0x18d   :  { %2114 = vmatpush3.msra.mxu1 %v2656_v28  ;;  %2072 = vmatprep.subr.mxu0 %v2685_v52  ;;  %v3035_v28 = vld [vmem:[#allocation20_spill] sm:$0xff] }
 0x18e   :  { %2115 = vmatprep.subr.mxu1 %v2658_v29  ;;  %2073 = vmatpush3.msra.mxu0 %v2685_v52 }
 0x18f   :  { %2116 = vmatpush3.msra.mxu1 %v2658_v29  ;;  %2074 = vmatprep.subr.mxu0 %v2688_v53  ;;  %v3036_v29 = vld [vmem:[#allocation21_spill] sm:$0xff] }
 0x190   :  { %2117 = vmatprep.subr.mxu1 %v2670_v42  ;;  %2075 = vmatpush3.msra.mxu0 %v2688_v53 }
 0x191   :  { %2118 = vmatpush3.msra.mxu1 %v2670_v42  ;;  %2076 = vmatprep.subr.mxu0 %v2691_v57 }
 0x192   :  { %2119 = vmatprep.subr.mxu1 %v2728_v51  ;;  %2077 = vmatpush3.msra.mxu0 %v2691_v57 }
 0x193   :  { %2120 = vmatpush3.msra.mxu1 %v2728_v51  ;;  %2078 = vmatprep.subr.mxu0 %v2697_v61 }
 0x194   :  { %2121 = vmatprep.subr.mxu1 %v2735_v7  ;;  %2079 = vmatpush3.msra.mxu0 %v2697_v61 }
 0x195   :  { %2122 = vmatpush3.msra.mxu1 %v2735_v7  ;;  %2080 = vmatprep.subr.mxu0 %v3027_v4 }
 0x196   :  { %2123 = vmatprep.subr.mxu1 %v2745_v41  ;;  %2081 = vmatpush3.msra.mxu0 %v3027_v4 }
 0x197   :  { %2124 = vmatpush3.msra.mxu1 %v2745_v41  ;;  %2082 = vmatprep.subr.mxu0 %v3028_v9 }
 0x198   :  { %2125 = vmatprep.subr.mxu1 %v2757_v0  ;;  %2083 = vmatpush3.msra.mxu0 %v3028_v9 }
 0x199   :  { %2126 = vmatpush3.msra.mxu1 %v2757_v0  ;;  %2084 = vmatprep.subr.mxu0 %v3029_v10 }
 0x19a   :  { %2127 = vmatprep.subr.mxu1 %v2770_v16  ;;  %2085 = vmatpush3.msra.mxu0 %v3029_v10 }
 0x19b   :  { %2128 = vmatpush3.msra.mxu1 %v2770_v16  ;;  %2086 = vmatprep.subr.mxu0 %v3030_v19 }
 0x19c   :  { %2129 = vmatprep.subr.mxu1 %v2778_v43  ;;  %2087 = vmatpush3.msra.mxu0 %v3030_v19 }
 0x19d   :  { %2130 = vmatpush3.msra.mxu1 %v2778_v43  ;;  %2088 = vmatprep.subr.mxu0 %v3031_v20 }
 0x19e   :  { %2131 = vmatprep.subr.mxu1 %v2789_v13  ;;  %2089 = vmatpush3.msra.mxu0 %v3031_v20 }
 0x19f   :  { %2132 = vmatpush3.msra.mxu1 %v2789_v13  ;;  %2090 = vmatprep.subr.mxu0 %v3032_v21 }
 0x1a0   :  { %2133 = vmatprep.subr.mxu1 %v2802_v48  ;;  %2091 = vmatpush3.msra.mxu0 %v3032_v21 }
 0x1a1   :  { %2134 = vmatpush3.msra.mxu1 %v2802_v48  ;;  %2092 = vmatprep.subr.mxu0 %v3033_v26 }
 0x1a2   :  { %2136 = vmatmul.mubr.f32.vlgmr.msra.gmra.mxu1 %v2831_v25  ;;  %2093 = vmatpush3.msra.mxu0 %v3033_v26 }
 0x1a3   :  { %2094 = vmatprep.subr.mxu0 %v3034_v27 }
 0x1a4   :  { %2095 = vmatpush3.msra.mxu0 %v3034_v27 }
 0x1a5   :  { %2096 = vmatprep.subr.mxu0 %v3035_v28 }
 0x1a6   :  { %2097 = vmatpush3.msra.mxu0 %v3035_v28 }
 0x1a7   :  { %2098 = vmatprep.subr.mxu0 %v3036_v29 }
 0x1a8   :  { %2099 = vmatpush3.msra.mxu0 %v3036_v29 }
 0x1a9   :  { %2101 = vmatmul.mubr.f32.vlgmr.msra.gmra.mxu0 %v2831_v25 }
 0x21f   :  { %v1997_v39 = vpop.f32.mrf.mxu1 }
 0x221   :  { %v1044_v52 = vpop.f32.mrf.mxu1 }
 0x227   :  { %v1962_v33 = vpop.f32.mrf.mxu0 }
 0x228   :  { %v894_v45 = vadd.f32 %v1962_v33, %v1501_v34 }
 0x229   :  { %v883_v42 = vpop.f32.mrf.mxu0 }
 0x22a   :  { %v884_v47 = vadd.f32 %v1501_v34, %v883_v42  ;;  %v1051_v53 = vadd.f32 %v1997_v39, %v894_v45 }
 0x22c   :  { %v1045_v51 = vadd.f32 %v1044_v52, %v884_v47 }
 0x240   :  { %v2067_v57 = vpop.f32.mrf.mxu1 }
 0x242   :  { %v1250_v7 = vpop.f32.mrf.mxu1 }
 0x248   :  { %v2032_v46 = vpop.f32.mrf.mxu0 }
 0x249   :  { %v1162_v62 = vadd.f32 %v2032_v46, %v1051_v53 }
 0x24a   :  { %v1154_v61 = vpop.f32.mrf.mxu0 }
 0x24b   :  { %v1155_v2 = vadd.f32 %v1154_v61, %v1045_v51  ;;  %v1259_v36 = vadd.f32 %v2067_v57, %v1162_v62 }
 0x24d   :  { %v1251_v0 = vadd.f32 %v1250_v7, %v1155_v2 }
 0x262   :  { %v2137_v25 = vpop.f32.mrf.mxu1 }
 0x264   :  { %v1470_v58 = vpop.f32.mrf.mxu1 }
 0x269   :  { %v2102_v41 = vpop.f32.mrf.mxu0 }
 0x26a   :  { %v1384_v63 = vadd.f32 %v2102_v41, %v1259_v36 }
 0x26b   :  { %v1377_v11 = vpop.f32.mrf.mxu0 }
 0x26c   :  { %v1477_v16 = vadd.f32 %v2137_v25, %v1384_v63  ;;  %v1378_v43 = vadd.f32 %v1377_v11, %v1251_v0 }
 0x26e   :  { %1481 = vst [vmem:[#allocation8 + $0x8] sm:$0xff] %v1477_v16  ;;  %v1471_v8 = vadd.f32 %v1470_v58, %v1378_v43 }
 0x270   :  { %1480 = vst [vmem:[#allocation8] sm:$0xff] %v1471_v8 }
 0x271   :  { %2215 = shalt.err (!%p2212_p5)
}
 0x272   :  { %1493 = dma.vmem_to_hbm [thread:$0]  %s1488_s10, 256, %s2992_s5, [#allocation4], %s2232_s23, %s2232_s23, %s2233_s24  }
 0x273   :  { %2228 = dma.done.wait [#allocation4], 256  }
 0x274   :  { %2229 = vsyncadd [#allocation4], 4294967040 }
 0x275   :  { %1497 = vsyncpa [#allocation3], 1 }
 0x276   :  { %1498 = vsyncpa [#allocation6], 1 }
 0x277   :  { %1499 = vsyncpa [#allocation4], 1 }

</bundles_post_ra>
